<compile_context>
chip_gen: v6e
topology: v6e:2x2x1
jax: 0.10.0
libtpu: 0.0.40
codegen_flags: <defaults>
</compile_context>

<pallas_src>
import jax
import jax.numpy as jnp
from jax.experimental import pallas as pl
from jax.experimental.pallas import tpu as pltpu

HP = 128  # lane-aligned (padded) hidden width per gate


def gru_encoder_kernel(idx_ref,                       # SMEM (L,) int32 (scalar-prefetched)
                       emb_ref,                       # VMEM [V, E]
                       wih_ref, whh_ref,              # VMEM [E, 3*HP], [HP, 3*HP]
                       gbias_ref, bhn_ref, h0_ref,    # VMEM [1, 3*HP], [1, HP], [1, HP]
                       out_ref, hT_ref,               # VMEM [L, HP], [1, HP]
                       x_scratch):                    # VMEM [L, E]
    L, hp = out_ref.shape

    # --- 1. Row gather: in-VMEM dynamic-slice copies (no DMA, no semaphores). ---------
    for t in range(L):
        tok = idx_ref[t]
        x_scratch[pl.ds(t, 1), :] = emb_ref[pl.ds(tok, 1), :]

    # Dropout layer: identity in eval mode (no stochastic masking here).

    # --- 2. Hoisted input projection: ONE MXU matmul for all timesteps. ---------------
    #        gbias already folds b_ih (all gates) + b_hh (r, z gates).
    gi = (jnp.dot(x_scratch[...], wih_ref[...], preferred_element_type=jnp.float32)
          + gbias_ref[...])                                           # (L, 3*HP)

    b_hn = bhn_ref[...]                                               # (1, HP) n-gate hidden bias
    w_hh = whh_ref[...]                                               # (HP, 3*HP)

    # --- 3. Serial recurrence: only gh = h @ W_hh^T per step; fused r/z sigmoid. ------
    h = h0_ref[...]                                                   # (1, HP)
    for t in range(L):
        gh = jnp.dot(h, w_hh, preferred_element_type=jnp.float32)     # (1, 3*HP)
        gi_t = gi[t:t + 1, :]                                         # (1, 3*HP) static slice
        rz = jax.nn.sigmoid(gi_t[:, :2 * hp] + gh[:, :2 * hp])        # one fused EUP call
        r = rz[:, :hp]
        z = rz[:, hp:2 * hp]
        n = jnp.tanh(gi_t[:, 2 * hp:] + r * (gh[:, 2 * hp:] + b_hn))
        h = (1.0 - z) * n + z * h
        out_ref[pl.ds(t, 1), :] = h                                   # lane-dense store

    hT_ref[...] = h


def _pad_gate_cols(m, H):
    """(in_dim, 3H) with gate order r,z,n -> (in_dim, 3*HP), each gate lane-padded to HP."""
    out = jnp.zeros((m.shape[0], 3 * HP), m.dtype)
    for g in range(3):
        out = out.at[:, g * HP:g * HP + H].set(m[:, g * H:(g + 1) * H])
    return out


def _prepare_padded_params(params):
    emb, w_ih_t, w_hh_t, b_ih, b_hh = params
    H = w_hh_t.shape[0]
    wih_pad = _pad_gate_cols(w_ih_t, H)                                      # (E, 3*HP)
    whh_pad = jnp.zeros((HP, 3 * HP), w_hh_t.dtype).at[:H].set(_pad_gate_cols(w_hh_t, H))
    folded = jnp.concatenate(
        [b_ih[:, 0:H] + b_hh[:, 0:H],                                        # r: b_ir + b_hr
         b_ih[:, H:2 * H] + b_hh[:, H:2 * H],                                # z: b_iz + b_hz
         b_ih[:, 2 * H:3 * H]],                                              # n: b_in only
        axis=1)
    gbias_pad = _pad_gate_cols(folded, H)                                    # (1, 3*HP)
    bhn_pad = jnp.zeros((1, HP), b_hh.dtype).at[:, :H].set(b_hh[:, 2 * H:3 * H])
    return emb, wih_pad, whh_pad, gbias_pad, bhn_pad


def sequence_encoder_forward(tokens, initial_hidden, params):
    """tokens: int32 [L]; initial_hidden: float32 [1, 1, H] (num_layers=1, batch=1)."""
    emb, w_ih_t, w_hh_t, b_ih, b_hh = params
    L = tokens.shape[0]
    V, E = emb.shape
    H = w_hh_t.shape[0]

    emb_p, wih_pad, whh_pad, gbias_pad, bhn_pad = _prepare_padded_params(params)
    h0_pad = jnp.zeros((1, HP), jnp.float32).at[:, :H].set(
        initial_hidden.reshape(1, H).astype(jnp.float32))
    # Clamp ids: OOB ids would otherwise read arbitrary rows (torch would error instead).
    ids = jnp.clip(tokens.astype(jnp.int32), 0, V - 1)

    full = lambda shape: pl.BlockSpec(shape, lambda i, idx: tuple(0 for _ in shape))

    out_pad, hT_pad = pl.pallas_call(
        gru_encoder_kernel,
        out_shape=(
            jax.ShapeDtypeStruct((L, HP), jnp.float32),
            jax.ShapeDtypeStruct((1, HP), jnp.float32),
        ),
        grid_spec=pltpu.PrefetchScalarGridSpec(
            num_scalar_prefetch=1,
            grid=(1,),
            in_specs=[
                full((V, E)),          # embedding table (tiny: stage whole table in VMEM)
                full((E, 3 * HP)),     # W_ih^T, gate-padded
                full((HP, 3 * HP)),    # W_hh^T, gate-padded
                full((1, 3 * HP)),     # folded gate biases
                full((1, HP)),         # b_hh (n gate)
                full((1, HP)),         # h0 (padded)
            ],
            out_specs=(full((L, HP)), full((1, HP))),
            scratch_shapes=[
                pltpu.VMEM((L, E), jnp.float32),       # gathered embedding rows
            ],
        ),
        compiler_params=pltpu.CompilerParams(
            dimension_semantics=("arbitrary",)),
    )(ids, emb_p, wih_pad, whh_pad, gbias_pad, bhn_pad, h0_pad)

    # Match torch.nn.GRU output shapes: (seq_len, batch=1, H) and (num_layers=1, 1, H).
    return out_pad[:, :H].reshape(L, 1, H), hT_pad[:, :H].reshape(1, 1, H)


def reference_forward(tokens, initial_hidden, params):
    """Pure-JAX reference of the same forward pass (for correctness checking)."""
    emb, w_ih_t, w_hh_t, b_ih, b_hh = params
    H = w_hh_t.shape[0]
    x_seq = emb[tokens]                                           # (L, E)
    h0 = initial_hidden.reshape(1, H)

    def step(h, x):
        x = x[None, :]
        gi = x @ w_ih_t + b_ih
        gh = h @ w_hh_t + b_hh
        r = jax.nn.sigmoid(gi[:, 0:H] + gh[:, 0:H])
        z = jax.nn.sigmoid(gi[:, H:2 * H] + gh[:, H:2 * H])
        n = jnp.tanh(gi[:, 2 * H:3 * H] + r * gh[:, 2 * H:3 * H])
        h_new = (1.0 - z) * n + z * h
        return h_new, h_new[0]

    h_final, outs = jax.lax.scan(step, h0, x_seq)
    return outs.reshape(-1, 1, H), h_final.reshape(1, 1, H)


def init_params(key, vocabulary_size, embed_size, hidden_units):
    """Deterministic parameter init matching torch layer shapes (GRU gate order r,z,n)."""
    k_emb, k_wih, k_whh, k_bih, k_bhh = jax.random.split(key, 5)
    bound = 1.0 / jnp.sqrt(hidden_units)
    emb = jax.random.normal(k_emb, (vocabulary_size, embed_size), jnp.float32)
    w_ih = jax.random.uniform(k_wih, (3 * hidden_units, embed_size), jnp.float32, -bound, bound)
    w_hh = jax.random.uniform(k_whh, (3 * hidden_units, hidden_units), jnp.float32, -bound, bound)
    b_ih = jax.random.uniform(k_bih, (3 * hidden_units,), jnp.float32, -bound, bound)
    b_hh = jax.random.uniform(k_bhh, (3 * hidden_units,), jnp.float32, -bound, bound)
    # Pre-transpose weights for row-vector matmuls inside the kernel.
    return (emb, w_ih.T, w_hh.T, b_ih.reshape(1, -1), b_hh.reshape(1, -1))


if __name__ == "__main__":
    vocabulary_size, embed_size, hidden_units = 50, 32, 32
    seq_len = 8

    key = jax.random.PRNGKey(0)
    k_tok, k_param = jax.random.split(key)
    params = init_params(k_param, vocabulary_size, embed_size, hidden_units)
    tokens = jax.random.randint(k_tok, (seq_len,), 0, vocabulary_size, dtype=jnp.int32)
    initial_hidden = jnp.zeros((1, 1, hidden_units), jnp.float32)   # initialize_hidden_state()

    out, h_t = sequence_encoder_forward(tokens, initial_hidden, params)
    out, h_t = jax.block_until_ready((out, h_t))

    ref_out, ref_h = reference_forward(tokens, initial_hidden, params)
    assert out.shape == (seq_len, 1, hidden_units)
    assert h_t.shape == (1, 1, hidden_units)
    assert jnp.allclose(out, ref_out, atol=1e-5), "rnn_output mismatch vs reference"
    assert jnp.allclose(h_t, ref_h, atol=1e-5), "hidden mismatch vs reference"

    print("KERNEL_OK")
</pallas_src>

<mosaic_0001>
module attributes {stable_mosaic.version = 11 : i64} {
  func.func @gru_encoder_kernel(%arg0: i32, %arg1: memref<8xi32, #tpu.memory_space<smem>>, %arg2: memref<50x32xf32, #tpu.memory_space<vmem>>, %arg3: memref<32x384xf32, #tpu.memory_space<vmem>>, %arg4: memref<128x384xf32, #tpu.memory_space<vmem>>, %arg5: memref<1x384xf32, #tpu.memory_space<vmem>>, %arg6: memref<1x128xf32, #tpu.memory_space<vmem>>, %arg7: memref<1x128xf32, #tpu.memory_space<vmem>>, %arg8: memref<8x128xf32, #tpu.memory_space<vmem>>, %arg9: memref<1x128xf32, #tpu.memory_space<vmem>>, %arg10: memref<8x32xf32, #tpu.memory_space<vmem>>) attributes {dimension_semantics = [#tpu.dimension_semantics<arbitrary>], iteration_bounds = array<i64: 1>, scalar_prefetch = 1 : i64, scratch_operands = 1 : i64, tpu.core_type = #tpu.core_type<tc>, window_params = [{pipeline_mode = #tpu.pipeline_mode<synchronous>, transform_indices = @transform_0, window_bounds = array<i64: 50, 32>}, {pipeline_mode = #tpu.pipeline_mode<synchronous>, transform_indices = @transform_1, window_bounds = array<i64: 32, 384>}, {pipeline_mode = #tpu.pipeline_mode<synchronous>, transform_indices = @transform_2, window_bounds = array<i64: 128, 384>}, {pipeline_mode = #tpu.pipeline_mode<synchronous>, transform_indices = @transform_3, window_bounds = array<i64: 1, 384>}, {pipeline_mode = #tpu.pipeline_mode<synchronous>, transform_indices = @transform_4, window_bounds = array<i64: 1, 128>}, {pipeline_mode = #tpu.pipeline_mode<synchronous>, transform_indices = @transform_5, window_bounds = array<i64: 1, 128>}, {pipeline_mode = #tpu.pipeline_mode<synchronous>, transform_indices = @transform_6, window_bounds = array<i64: 8, 128>}, {pipeline_mode = #tpu.pipeline_mode<synchronous>, transform_indices = @transform_7, window_bounds = array<i64: 1, 128>}]} {
    %c0 = arith.constant 0 : index
    %0 = memref.load %arg1[%c0] : memref<8xi32, #tpu.memory_space<smem>>
    %1 = arith.index_cast %0 : i32 to index
    %c0_0 = arith.constant 0 : index
    %2 = vector.load %arg2[%1, %c0_0] : memref<50x32xf32, #tpu.memory_space<vmem>>, vector<1x32xf32>
    %c0_1 = arith.constant 0 : index
    %c0_2 = arith.constant 0 : index
    %3 = vector.load %arg10[%c0_1, %c0_2] : memref<8x32xf32, #tpu.memory_space<vmem>>, vector<1x32xf32>
    tpu.vector_store %arg10[%c0_1, %c0_2], %2 {strides = array<i32>} : memref<8x32xf32, #tpu.memory_space<vmem>>, vector<1x32xf32>,
    %c1 = arith.constant 1 : index
    %4 = memref.load %arg1[%c1] : memref<8xi32, #tpu.memory_space<smem>>
    %5 = arith.index_cast %4 : i32 to index
    %c0_3 = arith.constant 0 : index
    %6 = vector.load %arg2[%5, %c0_3] : memref<50x32xf32, #tpu.memory_space<vmem>>, vector<1x32xf32>
    %c1_4 = arith.constant 1 : index
    %c0_5 = arith.constant 0 : index
    %7 = vector.load %arg10[%c1_4, %c0_5] : memref<8x32xf32, #tpu.memory_space<vmem>>, vector<1x32xf32>
    tpu.vector_store %arg10[%c1_4, %c0_5], %6 {strides = array<i32>} : memref<8x32xf32, #tpu.memory_space<vmem>>, vector<1x32xf32>,
    %c2 = arith.constant 2 : index
    %8 = memref.load %arg1[%c2] : memref<8xi32, #tpu.memory_space<smem>>
    %9 = arith.index_cast %8 : i32 to index
    %c0_6 = arith.constant 0 : index
    %10 = vector.load %arg2[%9, %c0_6] : memref<50x32xf32, #tpu.memory_space<vmem>>, vector<1x32xf32>
    %c2_7 = arith.constant 2 : index
    %c0_8 = arith.constant 0 : index
    %11 = vector.load %arg10[%c2_7, %c0_8] : memref<8x32xf32, #tpu.memory_space<vmem>>, vector<1x32xf32>
    tpu.vector_store %arg10[%c2_7, %c0_8], %10 {strides = array<i32>} : memref<8x32xf32, #tpu.memory_space<vmem>>, vector<1x32xf32>,
    %c3 = arith.constant 3 : index
    %12 = memref.load %arg1[%c3] : memref<8xi32, #tpu.memory_space<smem>>
    %13 = arith.index_cast %12 : i32 to index
    %c0_9 = arith.constant 0 : index
    %14 = vector.load %arg2[%13, %c0_9] : memref<50x32xf32, #tpu.memory_space<vmem>>, vector<1x32xf32>
    %c3_10 = arith.constant 3 : index
    %c0_11 = arith.constant 0 : index
    %15 = vector.load %arg10[%c3_10, %c0_11] : memref<8x32xf32, #tpu.memory_space<vmem>>, vector<1x32xf32>
    tpu.vector_store %arg10[%c3_10, %c0_11], %14 {strides = array<i32>} : memref<8x32xf32, #tpu.memory_space<vmem>>, vector<1x32xf32>,
    %c4 = arith.constant 4 : index
    %16 = memref.load %arg1[%c4] : memref<8xi32, #tpu.memory_space<smem>>
    %17 = arith.index_cast %16 : i32 to index
    %c0_12 = arith.constant 0 : index
    %18 = vector.load %arg2[%17, %c0_12] : memref<50x32xf32, #tpu.memory_space<vmem>>, vector<1x32xf32>
    %c4_13 = arith.constant 4 : index
    %c0_14 = arith.constant 0 : index
    %19 = vector.load %arg10[%c4_13, %c0_14] : memref<8x32xf32, #tpu.memory_space<vmem>>, vector<1x32xf32>
    tpu.vector_store %arg10[%c4_13, %c0_14], %18 {strides = array<i32>} : memref<8x32xf32, #tpu.memory_space<vmem>>, vector<1x32xf32>,
    %c5 = arith.constant 5 : index
    %20 = memref.load %arg1[%c5] : memref<8xi32, #tpu.memory_space<smem>>
    %21 = arith.index_cast %20 : i32 to index
    %c0_15 = arith.constant 0 : index
    %22 = vector.load %arg2[%21, %c0_15] : memref<50x32xf32, #tpu.memory_space<vmem>>, vector<1x32xf32>
    %c5_16 = arith.constant 5 : index
    %c0_17 = arith.constant 0 : index
    %23 = vector.load %arg10[%c5_16, %c0_17] : memref<8x32xf32, #tpu.memory_space<vmem>>, vector<1x32xf32>
    tpu.vector_store %arg10[%c5_16, %c0_17], %22 {strides = array<i32>} : memref<8x32xf32, #tpu.memory_space<vmem>>, vector<1x32xf32>,
    %c6 = arith.constant 6 : index
    %24 = memref.load %arg1[%c6] : memref<8xi32, #tpu.memory_space<smem>>
    %25 = arith.index_cast %24 : i32 to index
    %c0_18 = arith.constant 0 : index
    %26 = vector.load %arg2[%25, %c0_18] : memref<50x32xf32, #tpu.memory_space<vmem>>, vector<1x32xf32>
    %c6_19 = arith.constant 6 : index
    %c0_20 = arith.constant 0 : index
    %27 = vector.load %arg10[%c6_19, %c0_20] : memref<8x32xf32, #tpu.memory_space<vmem>>, vector<1x32xf32>
    tpu.vector_store %arg10[%c6_19, %c0_20], %26 {strides = array<i32>} : memref<8x32xf32, #tpu.memory_space<vmem>>, vector<1x32xf32>,
    %c7 = arith.constant 7 : index
    %28 = memref.load %arg1[%c7] : memref<8xi32, #tpu.memory_space<smem>>
    %29 = arith.index_cast %28 : i32 to index
    %c0_21 = arith.constant 0 : index
    %30 = vector.load %arg2[%29, %c0_21] : memref<50x32xf32, #tpu.memory_space<vmem>>, vector<1x32xf32>
    %c7_22 = arith.constant 7 : index
    %c0_23 = arith.constant 0 : index
    %31 = vector.load %arg10[%c7_22, %c0_23] : memref<8x32xf32, #tpu.memory_space<vmem>>, vector<1x32xf32>
    tpu.vector_store %arg10[%c7_22, %c0_23], %30 {strides = array<i32>} : memref<8x32xf32, #tpu.memory_space<vmem>>, vector<1x32xf32>,
    %c0_24 = arith.constant 0 : index
    %c0_25 = arith.constant 0 : index
    %32 = vector.load %arg10[%c0_24, %c0_25] : memref<8x32xf32, #tpu.memory_space<vmem>>, vector<8x32xf32>
    %c0_26 = arith.constant 0 : index
    %c0_27 = arith.constant 0 : index
    %33 = vector.load %arg3[%c0_26, %c0_27] : memref<32x384xf32, #tpu.memory_space<vmem>>, vector<32x384xf32>
    %cst = arith.constant dense<0.000000e+00> : vector<8x384xf32>
    %34 = tpu.matmul %32, %33, %cst {dimension_numbers = #tpu.dot_dimension_numbers<[1], [0], [0], [1], [0, 0, 1, 1], [], []>} : vector<8x32xf32>, vector<32x384xf32>, vector<8x384xf32> -> vector<8x384xf32>
    %c0_28 = arith.constant 0 : index
    %c0_29 = arith.constant 0 : index
    %35 = vector.load %arg5[%c0_28, %c0_29] : memref<1x384xf32, #tpu.memory_space<vmem>>, vector<1x384xf32>
    %36 = vector.broadcast %35 : vector<1x384xf32> to vector<8x384xf32>
    %37 = arith.addf %34, %36 : vector<8x384xf32>
    %c0_30 = arith.constant 0 : index
    %c0_31 = arith.constant 0 : index
    %38 = vector.load %arg6[%c0_30, %c0_31] : memref<1x128xf32, #tpu.memory_space<vmem>>, vector<1x128xf32>
    %c0_32 = arith.constant 0 : index
    %c0_33 = arith.constant 0 : index
    %39 = vector.load %arg4[%c0_32, %c0_33] : memref<128x384xf32, #tpu.memory_space<vmem>>, vector<128x384xf32>
    %c0_34 = arith.constant 0 : index
    %c0_35 = arith.constant 0 : index
    %40 = vector.load %arg7[%c0_34, %c0_35] : memref<1x128xf32, #tpu.memory_space<vmem>>, vector<1x128xf32>
    %cst_36 = arith.constant dense<0.000000e+00> : vector<1x384xf32>
    %41 = tpu.matmul %40, %39, %cst_36 {dimension_numbers = #tpu.dot_dimension_numbers<[1], [0], [0], [1], [0, 0, 1, 1], [], []>} : vector<1x128xf32>, vector<128x384xf32>, vector<1x384xf32> -> vector<1x384xf32>
    %42 = vector.extract_strided_slice %37 {offsets = [0, 0], sizes = [1, 384], strides = [1, 1]} : vector<8x384xf32> to vector<1x384xf32>
    %43 = vector.extract_strided_slice %42 {offsets = [0, 0], sizes = [1, 256], strides = [1, 1]} : vector<1x384xf32> to vector<1x256xf32>
    %44 = vector.extract_strided_slice %41 {offsets = [0, 0], sizes = [1, 256], strides = [1, 1]} : vector<1x384xf32> to vector<1x256xf32>
    %45 = arith.addf %43, %44 : vector<1x256xf32>
    %46 = arith.negf %45 : vector<1x256xf32>
    %47 = math.exp %46 : vector<1x256xf32>
    %cst_37 = arith.constant 1.000000e+00 : f32
    %48 = vector.broadcast %cst_37 : f32 to vector<1x256xf32>
    %49 = arith.addf %48, %47 : vector<1x256xf32>
    %50 = arith.divf %48, %49 : vector<1x256xf32>
    %51 = vector.extract_strided_slice %50 {offsets = [0, 0], sizes = [1, 128], strides = [1, 1]} : vector<1x256xf32> to vector<1x128xf32>
    %52 = vector.extract_strided_slice %50 {offsets = [0, 128], sizes = [1, 128], strides = [1, 1]} : vector<1x256xf32> to vector<1x128xf32>
    %53 = vector.extract_strided_slice %42 {offsets = [0, 256], sizes = [1, 128], strides = [1, 1]} : vector<1x384xf32> to vector<1x128xf32>
    %54 = vector.extract_strided_slice %41 {offsets = [0, 256], sizes = [1, 128], strides = [1, 1]} : vector<1x384xf32> to vector<1x128xf32>
    %55 = arith.addf %54, %38 : vector<1x128xf32>
    %56 = arith.mulf %51, %55 : vector<1x128xf32>
    %57 = arith.addf %53, %56 : vector<1x128xf32>
    %58 = math.tanh %57 : vector<1x128xf32>
    %cst_38 = arith.constant 1.000000e+00 : f32
    %59 = vector.broadcast %cst_38 : f32 to vector<1x128xf32>
    %60 = arith.subf %59, %52 : vector<1x128xf32>
    %61 = arith.mulf %60, %58 : vector<1x128xf32>
    %62 = arith.mulf %52, %40 : vector<1x128xf32>
    %63 = arith.addf %61, %62 : vector<1x128xf32>
    %c0_39 = arith.constant 0 : index
    %c0_40 = arith.constant 0 : index
    %64 = vector.load %arg8[%c0_39, %c0_40] : memref<8x128xf32, #tpu.memory_space<vmem>>, vector<1x128xf32>
    tpu.vector_store %arg8[%c0_39, %c0_40], %63 {strides = array<i32>} : memref<8x128xf32, #tpu.memory_space<vmem>>, vector<1x128xf32>,
    %cst_41 = arith.constant dense<0.000000e+00> : vector<1x384xf32>
    %65 = tpu.matmul %63, %39, %cst_41 {dimension_numbers = #tpu.dot_dimension_numbers<[1], [0], [0], [1], [0, 0, 1, 1], [], []>} : vector<1x128xf32>, vector<128x384xf32>, vector<1x384xf32> -> vector<1x384xf32>
    %66 = vector.extract_strided_slice %37 {offsets = [1, 0], sizes = [1, 384], strides = [1, 1]} : vector<8x384xf32> to vector<1x384xf32>
    %67 = vector.extract_strided_slice %66 {offsets = [0, 0], sizes = [1, 256], strides = [1, 1]} : vector<1x384xf32> to vector<1x256xf32>
    %68 = vector.extract_strided_slice %65 {offsets = [0, 0], sizes = [1, 256], strides = [1, 1]} : vector<1x384xf32> to vector<1x256xf32>
    %69 = arith.addf %67, %68 : vector<1x256xf32>
    %70 = arith.negf %69 : vector<1x256xf32>
    %71 = math.exp %70 : vector<1x256xf32>
    %cst_42 = arith.constant 1.000000e+00 : f32
    %72 = vector.broadcast %cst_42 : f32 to vector<1x256xf32>
    %73 = arith.addf %72, %71 : vector<1x256xf32>
    %74 = arith.divf %72, %73 : vector<1x256xf32>
    %75 = vector.extract_strided_slice %74 {offsets = [0, 0], sizes = [1, 128], strides = [1, 1]} : vector<1x256xf32> to vector<1x128xf32>
    %76 = vector.extract_strided_slice %74 {offsets = [0, 128], sizes = [1, 128], strides = [1, 1]} : vector<1x256xf32> to vector<1x128xf32>
    %77 = vector.extract_strided_slice %66 {offsets = [0, 256], sizes = [1, 128], strides = [1, 1]} : vector<1x384xf32> to vector<1x128xf32>
    %78 = vector.extract_strided_slice %65 {offsets = [0, 256], sizes = [1, 128], strides = [1, 1]} : vector<1x384xf32> to vector<1x128xf32>
    %79 = arith.addf %78, %38 : vector<1x128xf32>
    %80 = arith.mulf %75, %79 : vector<1x128xf32>
    %81 = arith.addf %77, %80 : vector<1x128xf32>
    %82 = math.tanh %81 : vector<1x128xf32>
    %cst_43 = arith.constant 1.000000e+00 : f32
    %83 = vector.broadcast %cst_43 : f32 to vector<1x128xf32>
    %84 = arith.subf %83, %76 : vector<1x128xf32>
    %85 = arith.mulf %84, %82 : vector<1x128xf32>
    %86 = arith.mulf %76, %63 : vector<1x128xf32>
    %87 = arith.addf %85, %86 : vector<1x128xf32>
    %c1_44 = arith.constant 1 : index
    %c0_45 = arith.constant 0 : index
    %88 = vector.load %arg8[%c1_44, %c0_45] : memref<8x128xf32, #tpu.memory_space<vmem>>, vector<1x128xf32>
    tpu.vector_store %arg8[%c1_44, %c0_45], %87 {strides = array<i32>} : memref<8x128xf32, #tpu.memory_space<vmem>>, vector<1x128xf32>,
    %cst_46 = arith.constant dense<0.000000e+00> : vector<1x384xf32>
    %89 = tpu.matmul %87, %39, %cst_46 {dimension_numbers = #tpu.dot_dimension_numbers<[1], [0], [0], [1], [0, 0, 1, 1], [], []>} : vector<1x128xf32>, vector<128x384xf32>, vector<1x384xf32> -> vector<1x384xf32>
    %90 = vector.extract_strided_slice %37 {offsets = [2, 0], sizes = [1, 384], strides = [1, 1]} : vector<8x384xf32> to vector<1x384xf32>
    %91 = vector.extract_strided_slice %90 {offsets = [0, 0], sizes = [1, 256], strides = [1, 1]} : vector<1x384xf32> to vector<1x256xf32>
    %92 = vector.extract_strided_slice %89 {offsets = [0, 0], sizes = [1, 256], strides = [1, 1]} : vector<1x384xf32> to vector<1x256xf32>
    %93 = arith.addf %91, %92 : vector<1x256xf32>
    %94 = arith.negf %93 : vector<1x256xf32>
    %95 = math.exp %94 : vector<1x256xf32>
    %cst_47 = arith.constant 1.000000e+00 : f32
    %96 = vector.broadcast %cst_47 : f32 to vector<1x256xf32>
    %97 = arith.addf %96, %95 : vector<1x256xf32>
    %98 = arith.divf %96, %97 : vector<1x256xf32>
    %99 = vector.extract_strided_slice %98 {offsets = [0, 0], sizes = [1, 128], strides = [1, 1]} : vector<1x256xf32> to vector<1x128xf32>
    %100 = vector.extract_strided_slice %98 {offsets = [0, 128], sizes = [1, 128], strides = [1, 1]} : vector<1x256xf32> to vector<1x128xf32>
    %101 = vector.extract_strided_slice %90 {offsets = [0, 256], sizes = [1, 128], strides = [1, 1]} : vector<1x384xf32> to vector<1x128xf32>
    %102 = vector.extract_strided_slice %89 {offsets = [0, 256], sizes = [1, 128], strides = [1, 1]} : vector<1x384xf32> to vector<1x128xf32>
    %103 = arith.addf %102, %38 : vector<1x128xf32>
    %104 = arith.mulf %99, %103 : vector<1x128xf32>
    %105 = arith.addf %101, %104 : vector<1x128xf32>
    %106 = math.tanh %105 : vector<1x128xf32>
    %cst_48 = arith.constant 1.000000e+00 : f32
    %107 = vector.broadcast %cst_48 : f32 to vector<1x128xf32>
    %108 = arith.subf %107, %100 : vector<1x128xf32>
    %109 = arith.mulf %108, %106 : vector<1x128xf32>
    %110 = arith.mulf %100, %87 : vector<1x128xf32>
    %111 = arith.addf %109, %110 : vector<1x128xf32>
    %c2_49 = arith.constant 2 : index
    %c0_50 = arith.constant 0 : index
    %112 = vector.load %arg8[%c2_49, %c0_50] : memref<8x128xf32, #tpu.memory_space<vmem>>, vector<1x128xf32>
    tpu.vector_store %arg8[%c2_49, %c0_50], %111 {strides = array<i32>} : memref<8x128xf32, #tpu.memory_space<vmem>>, vector<1x128xf32>,
    %cst_51 = arith.constant dense<0.000000e+00> : vector<1x384xf32>
    %113 = tpu.matmul %111, %39, %cst_51 {dimension_numbers = #tpu.dot_dimension_numbers<[1], [0], [0], [1], [0, 0, 1, 1], [], []>} : vector<1x128xf32>, vector<128x384xf32>, vector<1x384xf32> -> vector<1x384xf32>
    %114 = vector.extract_strided_slice %37 {offsets = [3, 0], sizes = [1, 384], strides = [1, 1]} : vector<8x384xf32> to vector<1x384xf32>
    %115 = vector.extract_strided_slice %114 {offsets = [0, 0], sizes = [1, 256], strides = [1, 1]} : vector<1x384xf32> to vector<1x256xf32>
    %116 = vector.extract_strided_slice %113 {offsets = [0, 0], sizes = [1, 256], strides = [1, 1]} : vector<1x384xf32> to vector<1x256xf32>
    %117 = arith.addf %115, %116 : vector<1x256xf32>
    %118 = arith.negf %117 : vector<1x256xf32>
    %119 = math.exp %118 : vector<1x256xf32>
    %cst_52 = arith.constant 1.000000e+00 : f32
    %120 = vector.broadcast %cst_52 : f32 to vector<1x256xf32>
    %121 = arith.addf %120, %119 : vector<1x256xf32>
    %122 = arith.divf %120, %121 : vector<1x256xf32>
    %123 = vector.extract_strided_slice %122 {offsets = [0, 0], sizes = [1, 128], strides = [1, 1]} : vector<1x256xf32> to vector<1x128xf32>
    %124 = vector.extract_strided_slice %122 {offsets = [0, 128], sizes = [1, 128], strides = [1, 1]} : vector<1x256xf32> to vector<1x128xf32>
    %125 = vector.extract_strided_slice %114 {offsets = [0, 256], sizes = [1, 128], strides = [1, 1]} : vector<1x384xf32> to vector<1x128xf32>
    %126 = vector.extract_strided_slice %113 {offsets = [0, 256], sizes = [1, 128], strides = [1, 1]} : vector<1x384xf32> to vector<1x128xf32>
    %127 = arith.addf %126, %38 : vector<1x128xf32>
    %128 = arith.mulf %123, %127 : vector<1x128xf32>
    %129 = arith.addf %125, %128 : vector<1x128xf32>
    %130 = math.tanh %129 : vector<1x128xf32>
    %cst_53 = arith.constant 1.000000e+00 : f32
    %131 = vector.broadcast %cst_53 : f32 to vector<1x128xf32>
    %132 = arith.subf %131, %124 : vector<1x128xf32>
    %133 = arith.mulf %132, %130 : vector<1x128xf32>
    %134 = arith.mulf %124, %111 : vector<1x128xf32>
    %135 = arith.addf %133, %134 : vector<1x128xf32>
    %c3_54 = arith.constant 3 : index
    %c0_55 = arith.constant 0 : index
    %136 = vector.load %arg8[%c3_54, %c0_55] : memref<8x128xf32, #tpu.memory_space<vmem>>, vector<1x128xf32>
    tpu.vector_store %arg8[%c3_54, %c0_55], %135 {strides = array<i32>} : memref<8x128xf32, #tpu.memory_space<vmem>>, vector<1x128xf32>,
    %cst_56 = arith.constant dense<0.000000e+00> : vector<1x384xf32>
    %137 = tpu.matmul %135, %39, %cst_56 {dimension_numbers = #tpu.dot_dimension_numbers<[1], [0], [0], [1], [0, 0, 1, 1], [], []>} : vector<1x128xf32>, vector<128x384xf32>, vector<1x384xf32> -> vector<1x384xf32>
    %138 = vector.extract_strided_slice %37 {offsets = [4, 0], sizes = [1, 384], strides = [1, 1]} : vector<8x384xf32> to vector<1x384xf32>
    %139 = vector.extract_strided_slice %138 {offsets = [0, 0], sizes = [1, 256], strides = [1, 1]} : vector<1x384xf32> to vector<1x256xf32>
    %140 = vector.extract_strided_slice %137 {offsets = [0, 0], sizes = [1, 256], strides = [1, 1]} : vector<1x384xf32> to vector<1x256xf32>
    %141 = arith.addf %139, %140 : vector<1x256xf32>
    %142 = arith.negf %141 : vector<1x256xf32>
    %143 = math.exp %142 : vector<1x256xf32>
    %cst_57 = arith.constant 1.000000e+00 : f32
    %144 = vector.broadcast %cst_57 : f32 to vector<1x256xf32>
    %145 = arith.addf %144, %143 : vector<1x256xf32>
    %146 = arith.divf %144, %145 : vector<1x256xf32>
    %147 = vector.extract_strided_slice %146 {offsets = [0, 0], sizes = [1, 128], strides = [1, 1]} : vector<1x256xf32> to vector<1x128xf32>
    %148 = vector.extract_strided_slice %146 {offsets = [0, 128], sizes = [1, 128], strides = [1, 1]} : vector<1x256xf32> to vector<1x128xf32>
    %149 = vector.extract_strided_slice %138 {offsets = [0, 256], sizes = [1, 128], strides = [1, 1]} : vector<1x384xf32> to vector<1x128xf32>
    %150 = vector.extract_strided_slice %137 {offsets = [0, 256], sizes = [1, 128], strides = [1, 1]} : vector<1x384xf32> to vector<1x128xf32>
    %151 = arith.addf %150, %38 : vector<1x128xf32>
    %152 = arith.mulf %147, %151 : vector<1x128xf32>
    %153 = arith.addf %149, %152 : vector<1x128xf32>
    %154 = math.tanh %153 : vector<1x128xf32>
    %cst_58 = arith.constant 1.000000e+00 : f32
    %155 = vector.broadcast %cst_58 : f32 to vector<1x128xf32>
    %156 = arith.subf %155, %148 : vector<1x128xf32>
    %157 = arith.mulf %156, %154 : vector<1x128xf32>
    %158 = arith.mulf %148, %135 : vector<1x128xf32>
    %159 = arith.addf %157, %158 : vector<1x128xf32>
    %c4_59 = arith.constant 4 : index
    %c0_60 = arith.constant 0 : index
    %160 = vector.load %arg8[%c4_59, %c0_60] : memref<8x128xf32, #tpu.memory_space<vmem>>, vector<1x128xf32>
    tpu.vector_store %arg8[%c4_59, %c0_60], %159 {strides = array<i32>} : memref<8x128xf32, #tpu.memory_space<vmem>>, vector<1x128xf32>,
    %cst_61 = arith.constant dense<0.000000e+00> : vector<1x384xf32>
    %161 = tpu.matmul %159, %39, %cst_61 {dimension_numbers = #tpu.dot_dimension_numbers<[1], [0], [0], [1], [0, 0, 1, 1], [], []>} : vector<1x128xf32>, vector<128x384xf32>, vector<1x384xf32> -> vector<1x384xf32>
    %162 = vector.extract_strided_slice %37 {offsets = [5, 0], sizes = [1, 384], strides = [1, 1]} : vector<8x384xf32> to vector<1x384xf32>
    %163 = vector.extract_strided_slice %162 {offsets = [0, 0], sizes = [1, 256], strides = [1, 1]} : vector<1x384xf32> to vector<1x256xf32>
    %164 = vector.extract_strided_slice %161 {offsets = [0, 0], sizes = [1, 256], strides = [1, 1]} : vector<1x384xf32> to vector<1x256xf32>
    %165 = arith.addf %163, %164 : vector<1x256xf32>
    %166 = arith.negf %165 : vector<1x256xf32>
    %167 = math.exp %166 : vector<1x256xf32>
    %cst_62 = arith.constant 1.000000e+00 : f32
    %168 = vector.broadcast %cst_62 : f32 to vector<1x256xf32>
    %169 = arith.addf %168, %167 : vector<1x256xf32>
    %170 = arith.divf %168, %169 : vector<1x256xf32>
    %171 = vector.extract_strided_slice %170 {offsets = [0, 0], sizes = [1, 128], strides = [1, 1]} : vector<1x256xf32> to vector<1x128xf32>
    %172 = vector.extract_strided_slice %170 {offsets = [0, 128], sizes = [1, 128], strides = [1, 1]} : vector<1x256xf32> to vector<1x128xf32>
    %173 = vector.extract_strided_slice %162 {offsets = [0, 256], sizes = [1, 128], strides = [1, 1]} : vector<1x384xf32> to vector<1x128xf32>
    %174 = vector.extract_strided_slice %161 {offsets = [0, 256], sizes = [1, 128], strides = [1, 1]} : vector<1x384xf32> to vector<1x128xf32>
    %175 = arith.addf %174, %38 : vector<1x128xf32>
    %176 = arith.mulf %171, %175 : vector<1x128xf32>
    %177 = arith.addf %173, %176 : vector<1x128xf32>
    %178 = math.tanh %177 : vector<1x128xf32>
    %cst_63 = arith.constant 1.000000e+00 : f32
    %179 = vector.broadcast %cst_63 : f32 to vector<1x128xf32>
    %180 = arith.subf %179, %172 : vector<1x128xf32>
    %181 = arith.mulf %180, %178 : vector<1x128xf32>
    %182 = arith.mulf %172, %159 : vector<1x128xf32>
    %183 = arith.addf %181, %182 : vector<1x128xf32>
    %c5_64 = arith.constant 5 : index
    %c0_65 = arith.constant 0 : index
    %184 = vector.load %arg8[%c5_64, %c0_65] : memref<8x128xf32, #tpu.memory_space<vmem>>, vector<1x128xf32>
    tpu.vector_store %arg8[%c5_64, %c0_65], %183 {strides = array<i32>} : memref<8x128xf32, #tpu.memory_space<vmem>>, vector<1x128xf32>,
    %cst_66 = arith.constant dense<0.000000e+00> : vector<1x384xf32>
    %185 = tpu.matmul %183, %39, %cst_66 {dimension_numbers = #tpu.dot_dimension_numbers<[1], [0], [0], [1], [0, 0, 1, 1], [], []>} : vector<1x128xf32>, vector<128x384xf32>, vector<1x384xf32> -> vector<1x384xf32>
    %186 = vector.extract_strided_slice %37 {offsets = [6, 0], sizes = [1, 384], strides = [1, 1]} : vector<8x384xf32> to vector<1x384xf32>
    %187 = vector.extract_strided_slice %186 {offsets = [0, 0], sizes = [1, 256], strides = [1, 1]} : vector<1x384xf32> to vector<1x256xf32>
    %188 = vector.extract_strided_slice %185 {offsets = [0, 0], sizes = [1, 256], strides = [1, 1]} : vector<1x384xf32> to vector<1x256xf32>
    %189 = arith.addf %187, %188 : vector<1x256xf32>
    %190 = arith.negf %189 : vector<1x256xf32>
    %191 = math.exp %190 : vector<1x256xf32>
    %cst_67 = arith.constant 1.000000e+00 : f32
    %192 = vector.broadcast %cst_67 : f32 to vector<1x256xf32>
    %193 = arith.addf %192, %191 : vector<1x256xf32>
    %194 = arith.divf %192, %193 : vector<1x256xf32>
    %195 = vector.extract_strided_slice %194 {offsets = [0, 0], sizes = [1, 128], strides = [1, 1]} : vector<1x256xf32> to vector<1x128xf32>
    %196 = vector.extract_strided_slice %194 {offsets = [0, 128], sizes = [1, 128], strides = [1, 1]} : vector<1x256xf32> to vector<1x128xf32>
    %197 = vector.extract_strided_slice %186 {offsets = [0, 256], sizes = [1, 128], strides = [1, 1]} : vector<1x384xf32> to vector<1x128xf32>
    %198 = vector.extract_strided_slice %185 {offsets = [0, 256], sizes = [1, 128], strides = [1, 1]} : vector<1x384xf32> to vector<1x128xf32>
    %199 = arith.addf %198, %38 : vector<1x128xf32>
    %200 = arith.mulf %195, %199 : vector<1x128xf32>
    %201 = arith.addf %197, %200 : vector<1x128xf32>
    %202 = math.tanh %201 : vector<1x128xf32>
    %cst_68 = arith.constant 1.000000e+00 : f32
    %203 = vector.broadcast %cst_68 : f32 to vector<1x128xf32>
    %204 = arith.subf %203, %196 : vector<1x128xf32>
    %205 = arith.mulf %204, %202 : vector<1x128xf32>
    %206 = arith.mulf %196, %183 : vector<1x128xf32>
    %207 = arith.addf %205, %206 : vector<1x128xf32>
    %c6_69 = arith.constant 6 : index
    %c0_70 = arith.constant 0 : index
    %208 = vector.load %arg8[%c6_69, %c0_70] : memref<8x128xf32, #tpu.memory_space<vmem>>, vector<1x128xf32>
    tpu.vector_store %arg8[%c6_69, %c0_70], %207 {strides = array<i32>} : memref<8x128xf32, #tpu.memory_space<vmem>>, vector<1x128xf32>,
    %cst_71 = arith.constant dense<0.000000e+00> : vector<1x384xf32>
    %209 = tpu.matmul %207, %39, %cst_71 {dimension_numbers = #tpu.dot_dimension_numbers<[1], [0], [0], [1], [0, 0, 1, 1], [], []>} : vector<1x128xf32>, vector<128x384xf32>, vector<1x384xf32> -> vector<1x384xf32>
    %210 = vector.extract_strided_slice %37 {offsets = [7, 0], sizes = [1, 384], strides = [1, 1]} : vector<8x384xf32> to vector<1x384xf32>
    %211 = vector.extract_strided_slice %210 {offsets = [0, 0], sizes = [1, 256], strides = [1, 1]} : vector<1x384xf32> to vector<1x256xf32>
    %212 = vector.extract_strided_slice %209 {offsets = [0, 0], sizes = [1, 256], strides = [1, 1]} : vector<1x384xf32> to vector<1x256xf32>
    %213 = arith.addf %211, %212 : vector<1x256xf32>
    %214 = arith.negf %213 : vector<1x256xf32>
    %215 = math.exp %214 : vector<1x256xf32>
    %cst_72 = arith.constant 1.000000e+00 : f32
    %216 = vector.broadcast %cst_72 : f32 to vector<1x256xf32>
    %217 = arith.addf %216, %215 : vector<1x256xf32>
    %218 = arith.divf %216, %217 : vector<1x256xf32>
    %219 = vector.extract_strided_slice %218 {offsets = [0, 0], sizes = [1, 128], strides = [1, 1]} : vector<1x256xf32> to vector<1x128xf32>
    %220 = vector.extract_strided_slice %218 {offsets = [0, 128], sizes = [1, 128], strides = [1, 1]} : vector<1x256xf32> to vector<1x128xf32>
    %221 = vector.extract_strided_slice %210 {offsets = [0, 256], sizes = [1, 128], strides = [1, 1]} : vector<1x384xf32> to vector<1x128xf32>
    %222 = vector.extract_strided_slice %209 {offsets = [0, 256], sizes = [1, 128], strides = [1, 1]} : vector<1x384xf32> to vector<1x128xf32>
    %223 = arith.addf %222, %38 : vector<1x128xf32>
    %224 = arith.mulf %219, %223 : vector<1x128xf32>
    %225 = arith.addf %221, %224 : vector<1x128xf32>
    %226 = math.tanh %225 : vector<1x128xf32>
    %cst_73 = arith.constant 1.000000e+00 : f32
    %227 = vector.broadcast %cst_73 : f32 to vector<1x128xf32>
    %228 = arith.subf %227, %220 : vector<1x128xf32>
    %229 = arith.mulf %228, %226 : vector<1x128xf32>
    %230 = arith.mulf %220, %207 : vector<1x128xf32>
    %231 = arith.addf %229, %230 : vector<1x128xf32>
    %c7_74 = arith.constant 7 : index
    %c0_75 = arith.constant 0 : index
    %232 = vector.load %arg8[%c7_74, %c0_75] : memref<8x128xf32, #tpu.memory_space<vmem>>, vector<1x128xf32>
    tpu.vector_store %arg8[%c7_74, %c0_75], %231 {strides = array<i32>} : memref<8x128xf32, #tpu.memory_space<vmem>>, vector<1x128xf32>,
    %c0_76 = arith.constant 0 : index
    %c0_77 = arith.constant 0 : index
    %233 = vector.load %arg9[%c0_76, %c0_77] : memref<1x128xf32, #tpu.memory_space<vmem>>, vector<1x128xf32>
    tpu.vector_store %arg9[%c0_76, %c0_77], %231 {strides = array<i32>} : memref<1x128xf32, #tpu.memory_space<vmem>>, vector<1x128xf32>,
    return
  }
  func.func @transform_0(%arg0: i32, %arg1: memref<8xi32, #tpu.memory_space<smem>>) -> (i32, i32) {
    %c0_i32 = arith.constant 0 : i32
    %c0_i32_0 = arith.constant 0 : i32
    %c0_i32_1 = arith.constant 0 : i32
    return %c0_i32, %c0_i32_0 : i32, i32
  }
  func.func @transform_1(%arg0: i32, %arg1: memref<8xi32, #tpu.memory_space<smem>>) -> (i32, i32) {
    %c0_i32 = arith.constant 0 : i32
    %c0_i32_0 = arith.constant 0 : i32
    %c0_i32_1 = arith.constant 0 : i32
    return %c0_i32, %c0_i32_0 : i32, i32
  }
  func.func @transform_2(%arg0: i32, %arg1: memref<8xi32, #tpu.memory_space<smem>>) -> (i32, i32) {
    %c0_i32 = arith.constant 0 : i32
    %c0_i32_0 = arith.constant 0 : i32
    %c0_i32_1 = arith.constant 0 : i32
    return %c0_i32, %c0_i32_0 : i32, i32
  }
  func.func @transform_3(%arg0: i32, %arg1: memref<8xi32, #tpu.memory_space<smem>>) -> (i32, i32) {
    %c0_i32 = arith.constant 0 : i32
    %c0_i32_0 = arith.constant 0 : i32
    %c0_i32_1 = arith.constant 0 : i32
    return %c0_i32, %c0_i32_0 : i32, i32
  }
  func.func @transform_4(%arg0: i32, %arg1: memref<8xi32, #tpu.memory_space<smem>>) -> (i32, i32) {
    %c0_i32 = arith.constant 0 : i32
    %c0_i32_0 = arith.constant 0 : i32
    %c0_i32_1 = arith.constant 0 : i32
    return %c0_i32, %c0_i32_0 : i32, i32
  }
  func.func @transform_5(%arg0: i32, %arg1: memref<8xi32, #tpu.memory_space<smem>>) -> (i32, i32) {
    %c0_i32 = arith.constant 0 : i32
    %c0_i32_0 = arith.constant 0 : i32
    %c0_i32_1 = arith.constant 0 : i32
    return %c0_i32, %c0_i32_0 : i32, i32
  }
  func.func @transform_6(%arg0: i32, %arg1: memref<8xi32, #tpu.memory_space<smem>>) -> (i32, i32) {
    %c0_i32 = arith.constant 0 : i32
    %c0_i32_0 = arith.constant 0 : i32
    %c0_i32_1 = arith.constant 0 : i32
    return %c0_i32, %c0_i32_0 : i32, i32
  }
  func.func @transform_7(%arg0: i32, %arg1: memref<8xi32, #tpu.memory_space<smem>>) -> (i32, i32) {
    %c0_i32 = arith.constant 0 : i32
    %c0_i32_0 = arith.constant 0 : i32
    %c0_i32_1 = arith.constant 0 : i32
    return %c0_i32, %c0_i32_0 : i32, i32
  }
}

</mosaic_0001>

<bundles_post_ra>
// kernel: tpu_custom_call.1
= control target key start
LH: loop header
LB: loop body
LE: loop exit
PB: predicated region body
PF: predicated region fallthrough
CT: control target
= control target key end

     0   :  { %s3400_s0 = inlined_call_operand.vmem [shape: s32[8], index: 0, kind: input, shape index: {}]   ;;  %s3401_s1 = inlined_call_operand.vmem [shape: f32[50,32], index: 1, kind: input, shape index: {}]   ;;  %s3402_s2 = inlined_call_operand.hbm [shape: f32[32,384], index: 2, kind: input, shape index: {}]   ;;  %s3403_s3 = inlined_call_operand.hbm [shape: f32[128,384], index: 3, kind: input, shape index: {}]   ;;  %s3404_s4 = inlined_call_operand.vmem [shape: f32[1,384], index: 4, kind: input, shape index: {}]   ;;  %s3405_s5 = inlined_call_operand.vmem [shape: f32[1,128], index: 5, kind: input, shape index: {}]   ;;  %s3406_s6 = inlined_call_operand.vmem [shape: f32[1,128], index: 6, kind: input, shape index: {}]   ;;  %s3407_s7 = inlined_call_operand.hbm [shape: f32[8,128], index: 7, kind: output, shape index: {0}]   ;;  %s3408_s8 = inlined_call_operand.hbm [shape: f32[1,128], index: 8, kind: output, shape index: {1}]  }
   0x1   :  { %s14_s29 = sshll.u32 %s3400_s0, 4  ;;  %s15_s29 = int_to_ptr.vmem [resolvable:$true] %s14_s29 }
   0x2   :  { %s2362_s30 = scalar_lea.vmem %s15_s29, 16  ;;  %p2367_p1 = scmp.lt.s32.totalorder %s15_s29, %s15_s29 }
   0x3   :  { %p2363_p0 = scmp.ne.s32.totalorder %s15_s29, %s2362_s30  ;;  %p2368_p2 = scmp.lt.s32.totalorder %s2362_s30, %s2362_s30 }
   0x5   :  { %p2369_p3 = por %p2368_p2, %p2367_p1 }
   0x7   :  { %p2370_p4 = pnand %p2369_p3, %p2363_p0 }
   0x9   :  { %2373 = shalt.err (!%p2370_p4)  }
   0xa   :  { %s2464_s9 = smov [#allocation4]  }
   0xb   :  { %17 = dma.vmem_to_smem %s15_s29, 16, %s2464_s9, [#allocation3] }
   0xc   :  { %2454 = dma.done.wait [#allocation3], 16 }
   0xd   :  { %2455 = vsyncadd [#allocation3], 4294967280 }
   0xe   :  { %19 = sfence }
   0xf   :  { %20 = vsyncpa [#allocation6], 0 }
  0x10   :  { %21 = vsyncpa [#allocation9], 0 }
  0x11   :  { %22 = vsyncpa [#allocation7], 0 }
  0x12   :  { %23 = vsyncpa [#allocation12], 0  ;;  %s2465_s10 = smov [#allocation5]  }
  0x13   :  { %s31_s11 = sshll.u32 %s2465_s10, 4  ;;  %s32_s11 = int_to_ptr.vmem [resolvable:$true] %s31_s11 }
  0x14   :  { %s2382_s0 = scalar_lea.vmem %s32_s11, 1536  ;;  %p2387_p6 = scmp.lt.s32.totalorder %s32_s11, %s32_s11 }
  0x15   :  { %p2383_p5 = scmp.ne.s32.totalorder %s32_s11, %s2382_s0  ;;  %p2388_p7 = scmp.lt.s32.totalorder %s2382_s0, %s2382_s0 }
  0x17   :  { %p2389_p8 = por %p2388_p7, %p2387_p6 }
  0x19   :  { %p2390_p9 = pnand %p2389_p8, %p2383_p5 }
  0x1b   :  { %2393 = shalt.err (!%p2390_p9)
}
  0x1c   :  { %s2466_s12 = smov 384   ;;  %s2467_s13 = smov 24  }
  0x1d   :  { %37 = dma.hbm_to_vmem [thread:$0]  %s3402_s2, 1536, %s32_s11, [#allocation6], %s2466_s12, %s2466_s12, %s2467_s13  }
  0x1e   :  { %s2468_s16 = smov [#allocation8]  }
  0x1f   :  { %s43_s17 = sshll.u32 %s2468_s16, 4  ;;  %s44_s17 = int_to_ptr.vmem [resolvable:$true] %s43_s17 }
  0x20   :  { %s2402_s18 = scalar_lea.vmem %s44_s17, 6144  ;;  %p2407_p11 = scmp.lt.s32.totalorder %s44_s17, %s44_s17 }
  0x21   :  { %p2403_p10 = scmp.ne.s32.totalorder %s44_s17, %s2402_s18  ;;  %p2408_p12 = scmp.lt.s32.totalorder %s2402_s18, %s2402_s18 }
  0x23   :  { %p2409_p13 = por %p2408_p12, %p2407_p11 }
  0x25   :  { %p2410_p0 = pnand %p2409_p13, %p2403_p10 }
  0x27   :  { %2413 = shalt.err (!%p2410_p0)
}
  0x28   :  { %49 = dma.hbm_to_vmem [thread:$0]  %s3403_s3, 6144, %s44_s17, [#allocation9], %s2466_s12, %s2466_s12, %s2467_s13  }
  0x29   :  { %2456 = dma.done.wait [#allocation6], 1536  }
  0x2a   :  { %2457 = vsyncadd [#allocation6], 4294965760 }
  0x2b   :  { %2458 = dma.done.wait [#allocation9], 6144  }
  0x2c   :  { %2459 = vsyncadd [#allocation9], 4294961152  ;;  %v3409_v0 = vmov 0.0   ;;  %s62_s2 = sld [smem:[#allocation4]]  ;;  %vm2470_vm0 = vmmov 0   ;;  %v106_v1 = vld [vmem:[#allocation5 + $0x50] sm:$0xff] }
  0x2d   :  { %193 = vmatprep.mubr.f32.mxu0 %v3409_v0  ;;  %1933 = vmatprep.subr.mxu1 %v3409_v0  ;;  %s1767_s21 = sld [smem:[#allocation4 + $0x1]]  ;;  %v105_v2 = vld [vmem:[#allocation5 + $0x48] sm:$0xff]  ;;  %v103_v3 = vld [vmem:[#allocation5 + $0x38] sm:$0xff]  ;;  %v102_v4 = vld [vmem:[#allocation5 + $0x30] sm:$0xff]  ;;  %vm65_vm1 = vcmask 253952   ;;  %vm125_vm2 = vcmask 261120  }
  0x2e   :  { %1941 = vmatprep.mubr.msk.f32.mxu1 %vm2470_vm0, %v3409_v0  ;;  %s1768_s22 = sld [smem:[#allocation4 + $0x2]]  ;;  %153 = vmatprep.subr.mxu0 %v106_v1  ;;  %v100_v5 = vld [vmem:[#allocation5 + $0x20] sm:$0xff]  ;;  %v99_v6 = vld [vmem:[#allocation5 + $0x18] sm:$0xff]  ;;  %v97_v10 = vld [vmem:[#allocation5 + $0x8] sm:$0xff] }
  0x2f   :  { %s1769_s23 = sld [smem:[#allocation4 + $0x3]]  ;;  %154 = vmatpush1.msra.mxu0 %v105_v2  ;;  %v96_v12 = vld [vmem:[#allocation5] sm:$0xff]  ;;  %v2563_v14 = vld [vmem:[#allocation8 + $0x170] sm:$0xff]  ;;  %v107_v18 = vld [vmem:[#allocation5 + $0x58] sm:$0xff] }
  0x30   :  { %s2531_s24 = sld [smem:[#allocation4 + $0x4]]  ;;  %155 = vmatprep.subr.mxu0 %v103_v3  ;;  %3433 = vst [vmem:[#allocation18_spill] sm:$0xff] %v2563_v14  ;;  %1934 = vmatpush3.msra.mxu1 %v107_v18  ;;  %v104_v19 = vld [vmem:[#allocation5 + $0x40] sm:$0xff]  ;;  %v2578_v20 = vld [vmem:[#allocation8 + $0x168] sm:$0xff]  ;;  %v2581_v23 = vld [vmem:[#allocation8 + $0x158] sm:$0xff] }
  0x31   :  { %s2533_s3 = sld [smem:[#allocation4 + $0x5]]  ;;  %156 = vmatpush1.msra.mxu0 %v102_v4  ;;  %1935 = vmatprep.subr.mxu1 %v3409_v0  ;;  %v101_v21 = vld [vmem:[#allocation5 + $0x28] sm:$0xff]  ;;  %v2584_v24 = vld [vmem:[#allocation8 + $0x150] sm:$0xff]  ;;  %v2588_v26 = vld [vmem:[#allocation8 + $0x140] sm:$0xff] }
  0x32   :  { %s63_s27 = scalar_lea.vmem %s3401_s1, %s62_s2  ;;  %s2538_s28 = sld [smem:[#allocation4 + $0x6]]  ;;  %157 = vmatprep.subr.mxu0 %v100_v5  ;;  %1936 = vmatpush3.msra.mxu1 %v104_v19  ;;  %v98_v25 = vld [vmem:[#allocation5 + $0x10] sm:$0xff]  ;;  %v2591_v27 = vld [vmem:[#allocation8 + $0x138] sm:$0xff]  ;;  %v2595_v28 = vld [vmem:[#allocation8 + $0x128] sm:$0xff] }
  0x33   :  { %s68_s9 = scalar_lea.vmem %s3401_s1, %s1767_s21  ;;  %s2543_s10 = sld [smem:[#allocation4 + $0x7]]  ;;  %v64_v7 = vld [vmem:[%s63_s27] sm:$0x1]  ;;  %158 = vmatpush1.msra.mxu0 %v99_v6  ;;  %1937 = vmatprep.subr.mxu1 %v3409_v0  ;;  %v2598_v29 = vld [vmem:[#allocation8 + $0x120] sm:$0xff]  ;;  %v2604_v31 = vld [vmem:[#allocation8 + $0x110] sm:$0xff] }
  0x34   :  { %s72_s12 = scalar_lea.vmem %s3401_s1, %s1768_s22  ;;  %v69_v8 = vld [vmem:[%s68_s9] sm:$0x1]  ;;  %66 = vst.msk [vmem:[#allocation2] sm:$0x1] %vm65_vm1, %v64_v7  ;;  %159 = vmatprep.subr.mxu0 %v97_v10  ;;  %1938 = vmatpush3.msra.mxu1 %v101_v21  ;;  %v2608_v32 = vld [vmem:[#allocation8 + $0x108] sm:$0xff]  ;;  %v2611_v33 = vld [vmem:[#allocation8 + $0x160] sm:$0xff]  ;;  %v110_v10 = vlaneseq }
  0x35   :  { %v73_v9 = vld [vmem:[%s72_s12] sm:$0x1]  ;;  %s76_s15 = scalar_lea.vmem %s3401_s1, %s1769_s23  ;;  %70 = vst.msk [vmem:[#allocation2 + $0x1] sm:$0x1] %vm65_vm1, %v69_v8  ;;  %160 = vmatpush1.msra.mxu0 %v96_v12  ;;  %1939 = vmatprep.subr.mxu1 %v3409_v0  ;;  %v2618_v35 = vld [vmem:[#allocation8 + $0xf0] sm:$0xff]  ;;  %v2621_v36 = vld [vmem:[#allocation8 + $0x148] sm:$0xff] }
  0x36   :  { %74 = vst.msk [vmem:[#allocation2 + $0x2] sm:$0x1] %vm65_vm1, %v73_v9  ;;  %v77_v11 = vld [vmem:[%s76_s15] sm:$0x1]  ;;  %s80_s18 = scalar_lea.vmem %s3401_s1, %s2531_s24  ;;  %320 = vmatprep.subr.mxu0 %v2563_v14  ;;  %1940 = vmatpush3.msra.mxu1 %v98_v25  ;;  %v2624_v37 = vld [vmem:[#allocation8 + $0xe0] sm:$0xff]  ;;  %v2631_v39 = vld [vmem:[#allocation8 + $0x130] sm:$0xff] }
  0x37   :  { %78 = vst.msk [vmem:[#allocation2 + $0x3] sm:$0x1] %vm65_vm1, %v77_v11  ;;  %v81_v13 = vld [vmem:[%s80_s18] sm:$0x1]  ;;  %s84_s2 = scalar_lea.vmem %s3401_s1, %s2533_s3  ;;  %1944 = vmatprep.subr.mxu1 %v3409_v0  ;;  %v2634_v40 = vld [vmem:[#allocation8 + $0xc8] sm:$0xff]  ;;  %v2638_v41 = vld [vmem:[#allocation8 + $0xc0] sm:$0xff] }
  0x38   :  { %82 = vst.msk [vmem:[#allocation2 + $0x4] sm:$0x1] %vm65_vm1, %v81_v13  ;;  %v85_v15 = vld [vmem:[%s84_s2] sm:$0x1]  ;;  %s88_s23 = scalar_lea.vmem %s3401_s1, %s2538_s28  ;;  %v2644_v43 = vld [vmem:[#allocation8 + $0xb0] sm:$0xff]  ;;  %v2648_v44 = vld [vmem:[#allocation8 + $0xa8] sm:$0xff] }
  0x39   :  { %86 = vst.msk [vmem:[#allocation2 + $0x5] sm:$0x1] %vm65_vm1, %v85_v15  ;;  %v89_v16 = vld [vmem:[%s88_s23] sm:$0x1]  ;;  %s92_s26 = scalar_lea.vmem %s3401_s1, %s2543_s10  ;;  %v2651_v45 = vld [vmem:[#allocation8 + $0x100] sm:$0xff]  ;;  %v2658_v47 = vld [vmem:[#allocation8 + $0x90] sm:$0xff] }
  0x3a   :  { %90 = vst.msk [vmem:[#allocation2 + $0x6] sm:$0x1] %vm65_vm1, %v89_v16  ;;  %v93_v17 = vld [vmem:[%s92_s26] sm:$0x1]  ;;  %v2661_v48 = vld [vmem:[#allocation8 + $0xe8] sm:$0xff]  ;;  %v2664_v49 = vld [vmem:[#allocation8 + $0x80] sm:$0xff] }
  0x3b   :  { %94 = vst.msk [vmem:[#allocation2 + $0x7] sm:$0x1] %vm65_vm1, %v93_v17  ;;  %v2601_v30 = vld [vmem:[#allocation8 + $0x178] sm:$0xff]  ;;  %v2671_v51 = vld [vmem:[#allocation8 + $0xd0] sm:$0xff]  ;;  %v2674_v52 = vld [vmem:[#allocation8 + $0x68] sm:$0xff]  ;;  %v111_v11 = vshrl.u32 %v110_v10, 7 }
  0x3c   :  { %v2614_v34 = vld [vmem:[#allocation8 + $0xf8] sm:$0xff]  ;;  %v2678_v53 = vld [vmem:[#allocation8 + $0x60] sm:$0xff]  ;;  %v2684_v55 = vld [vmem:[#allocation8 + $0x50] sm:$0xff]  ;;  %s2472_s10 = smov [#allocation11]  }
  0x3d   :  { %v2628_v38 = vld [vmem:[#allocation8 + $0xd8] sm:$0xff]  ;;  %v2688_v56 = vld [vmem:[#allocation8 + $0x48] sm:$0xff]  ;;  %v2691_v57 = vld [vmem:[#allocation8 + $0xa0] sm:$0xff]  ;;  %v112_v12 = vsub.s32 0, %v111_v11  ;;  %v116_v17 = vsub.s32 1, %v111_v11  ;;  %s1745_s11 = sshll.u32 %s2472_s10, 4  ;;  %s1746_s11 = int_to_ptr.vmem [resolvable:$true] %s1745_s11 }
  0x3e   :  { %v2641_v42 = vld [vmem:[#allocation8 + $0x118] sm:$0xff]  ;;  %v2698_v59 = vld [vmem:[#allocation8 + $0x30] sm:$0xff]  ;;  %v2701_v60 = vld [vmem:[#allocation8 + $0x88] sm:$0xff] }
  0x3f   :  { %v2654_v46 = vld [vmem:[#allocation8 + $0x98] sm:$0xff]  ;;  %v2704_v61 = vld [vmem:[#allocation8 + $0x20] sm:$0xff]  ;;  %v2711_v63 = vld [vmem:[#allocation8 + $0x70] sm:$0xff] }
  0x40   :  { %v2668_v50 = vld [vmem:[#allocation8 + $0x78] sm:$0xff]  ;;  %3434 = vst [vmem:[#allocation19_spill] sm:$0xff] %v2704_v61  ;;  %v2714_v1 = vld [vmem:[#allocation8 + $0x8] sm:$0xff]  ;;  %v2718_v2 = vld [vmem:[#allocation8] sm:$0xff] }
  0x41   :  { %v2681_v54 = vld [vmem:[#allocation8 + $0xb8] sm:$0xff]  ;;  %3436 = vst [vmem:[#allocation21_spill] sm:$0xff] %v2714_v1  ;;  %3437 = vst [vmem:[#allocation22_spill] sm:$0xff] %v2718_v2  ;;  %v2732_v5 = vld [vmem:[#allocation8 + $0x40] sm:$0xff] }
  0x42   :  { %v95_v22 = vld [vmem:[#allocation2] sm:$0xff]  ;;  %v2738_v6 = vld [vmem:[#allocation8 + $0x28] sm:$0xff]  ;;  %v2744_v7 = vld [vmem:[#allocation8 + $0x10] sm:$0xff] }
  0x43   :  { %1774 = vmatmul.mubr.msk.f32.vlgmr.msra.gmra.mxu0 %vm125_vm2, %v95_v22  ;;  %1942 = vmatmul.mubr.msk.f32.vlgmr.msra.gmra.mxu1 %vm125_vm2, %v95_v22  ;;  %v2694_v58 = vld [vmem:[#allocation8 + $0x38] sm:$0xff]  ;;  %3438 = vst [vmem:[#allocation23_spill] sm:$0xff] %v2738_v6  ;;  %3439 = vst [vmem:[#allocation24_spill] sm:$0xff] %v2744_v7 }
  0x44   :  { %321 = vmatpush1.msra.mxu0 %v2578_v20  ;;  %384 = vmatprep.mubr.f32.mxu0 %v3409_v0  ;;  %v2708_v62 = vld [vmem:[#allocation8 + $0x18] sm:$0xff] }
  0x45   :  { %322 = vmatprep.subr.mxu0 %v2581_v23  ;;  %1945 = vmatpush3.msra.mxu1 %v2601_v30  ;;  %3435 = vst [vmem:[#allocation20_spill] sm:$0xff] %v2708_v62  ;;  %v2721_v3 = vld [vmem:[#allocation8 + $0x58] sm:$0xff] }
  0x46   :  { %323 = vmatpush1.msra.mxu0 %v2584_v24  ;;  %1946 = vmatprep.subr.mxu1 %v3409_v0  ;;  %v2727_v4 = vld [vmem:[%s3406_s6] sm:$0x1] }
  0x47   :  { %324 = vmatprep.subr.mxu0 %v2588_v26  ;;  %1947 = vmatpush3.msra.mxu1 %v2611_v33  ;;  %v108_v13 = vld [vmem:[%s3404_s4] sm:$0x7] }
  0x48   :  { %325 = vmatpush1.msra.mxu0 %v2591_v27  ;;  %1948 = vmatprep.subr.mxu1 %v3409_v0  ;;  %v113_v16 = vrot.slane %v108_v13, %v112_v12  ;;  %v117_v22 = vrot.slane %v108_v13, %v116_v17  ;;  %v2831_v17 = vld [vmem:[%s3405_s5] sm:$0x1] }
  0x49   :  { %326 = vmatprep.subr.mxu0 %v2595_v28  ;;  %1949 = vmatpush3.msra.mxu1 %v2621_v36 }
  0x4a   :  { %327 = vmatpush1.msra.mxu0 %v2598_v29  ;;  %1950 = vmatprep.subr.mxu1 %v3409_v0 }
  0x4b   :  { %328 = vmatprep.subr.mxu0 %v2604_v31  ;;  %1951 = vmatpush3.msra.mxu1 %v2631_v39 }
  0x4c   :  { %329 = vmatpush1.msra.mxu0 %v2608_v32  ;;  %1952 = vmatprep.subr.mxu1 %v3409_v0 }
  0x4d   :  { %330 = vmatprep.subr.mxu0 %v2614_v34  ;;  %1953 = vmatpush3.msra.mxu1 %v2641_v42 }
  0x4e   :  { %331 = vmatpush1.msra.mxu0 %v2618_v35  ;;  %1954 = vmatprep.subr.mxu1 %v3409_v0 }
  0x4f   :  { %332 = vmatprep.subr.mxu0 %v2624_v37  ;;  %1955 = vmatpush3.msra.mxu1 %v2651_v45 }
  0x50   :  { %333 = vmatpush1.msra.mxu0 %v2628_v38  ;;  %1956 = vmatprep.subr.mxu1 %v3409_v0 }
  0x51   :  { %334 = vmatprep.subr.mxu0 %v2634_v40  ;;  %1957 = vmatpush3.msra.mxu1 %v2661_v48 }
  0x52   :  { %335 = vmatpush1.msra.mxu0 %v2638_v41  ;;  %1958 = vmatprep.subr.mxu1 %v3409_v0 }
  0x53   :  { %336 = vmatprep.subr.mxu0 %v2644_v43  ;;  %1959 = vmatpush3.msra.mxu1 %v2671_v51 }
  0x54   :  { %337 = vmatpush1.msra.mxu0 %v2648_v44  ;;  %1960 = vmatprep.subr.mxu1 %v3409_v0 }
  0x55   :  { %338 = vmatprep.subr.mxu0 %v2654_v46  ;;  %1961 = vmatpush3.msra.mxu1 %v2681_v54 }
  0x56   :  { %339 = vmatpush1.msra.mxu0 %v2658_v47  ;;  %1962 = vmatprep.subr.mxu1 %v3409_v0 }
  0x57   :  { %340 = vmatprep.subr.mxu0 %v2664_v49  ;;  %1963 = vmatpush3.msra.mxu1 %v2691_v57 }
  0x58   :  { %341 = vmatpush1.msra.mxu0 %v2668_v50  ;;  %1964 = vmatprep.subr.mxu1 %v3409_v0 }
  0x59   :  { %342 = vmatprep.subr.mxu0 %v2674_v52  ;;  %1965 = vmatpush3.msra.mxu1 %v2701_v60 }
  0x5a   :  { %343 = vmatpush1.msra.mxu0 %v2678_v53  ;;  %1966 = vmatprep.subr.mxu1 %v3409_v0 }
  0x5b   :  { %344 = vmatprep.subr.mxu0 %v2684_v55  ;;  %1967 = vmatpush3.msra.mxu1 %v2711_v63 }
  0x5c   :  { %345 = vmatpush1.msra.mxu0 %v2688_v56  ;;  %1968 = vmatprep.subr.mxu1 %v3409_v0 }
  0x5d   :  { %346 = vmatprep.subr.mxu0 %v2694_v58  ;;  %1969 = vmatpush3.msra.mxu1 %v2721_v3 }
  0x5e   :  { %347 = vmatpush1.msra.mxu0 %v2698_v59  ;;  %1970 = vmatprep.subr.mxu1 %v3409_v0 }
  0x5f   :  { %348 = vmatprep.subr.mxu0 %v2704_v61  ;;  %1971 = vmatpush3.msra.mxu1 %v2732_v5 }
  0x60   :  { %349 = vmatpush1.msra.mxu0 %v2708_v62  ;;  %1976 = vmatprep.mubr.msk.f32.mxu1 %vm2470_vm0, %v3409_v0 }
  0x61   :  { %350 = vmatprep.subr.mxu0 %v2714_v1  ;;  %1972 = vmatprep.subr.mxu1 %v3409_v0 }
  0x62   :  { %351 = vmatpush1.msra.mxu0 %v2718_v2  ;;  %1973 = vmatpush3.msra.mxu1 %v2738_v6 }
  0x63   :  { %385 = vmatmul.mubr.f32.vlgmr.msra.gmra.mxu0 %v2727_v4  ;;  %484 = vmatprep.subr.mxu0 %v2563_v14 }
  0x64   :  { %485 = vmatpush1.msra.mxu0 %v2578_v20  ;;  %1974 = vmatprep.subr.mxu1 %v3409_v0 }
  0x65   :  { %486 = vmatprep.subr.mxu0 %v2581_v23  ;;  %1975 = vmatpush3.msra.mxu1 %v2744_v7 }
  0x66   :  { %487 = vmatpush1.msra.mxu0 %v2584_v24  ;;  %1977 = vmatmul.mubr.f32.vlgmr.msra.gmra.mxu1 %v2727_v4 }
  0x67   :  { %1979 = vmatprep.subr.mxu1 %v3409_v0  ;;  %488 = vmatprep.subr.mxu0 %v2588_v26 }
  0x68   :  { %1980 = vmatpush3.msra.mxu1 %v2601_v30  ;;  %489 = vmatpush1.msra.mxu0 %v2591_v27 }
  0x69   :  { %1981 = vmatprep.subr.mxu1 %v3409_v0  ;;  %490 = vmatprep.subr.mxu0 %v2595_v28 }
  0x6a   :  { %1982 = vmatpush3.msra.mxu1 %v2611_v33  ;;  %491 = vmatpush1.msra.mxu0 %v2598_v29 }
  0x6b   :  { %1983 = vmatprep.subr.mxu1 %v3409_v0  ;;  %492 = vmatprep.subr.mxu0 %v2604_v31 }
  0x6c   :  { %1984 = vmatpush3.msra.mxu1 %v2621_v36  ;;  %493 = vmatpush1.msra.mxu0 %v2608_v32 }
  0x6d   :  { %1985 = vmatprep.subr.mxu1 %v3409_v0  ;;  %494 = vmatprep.subr.mxu0 %v2614_v34 }
  0x6e   :  { %1986 = vmatpush3.msra.mxu1 %v2631_v39  ;;  %495 = vmatpush1.msra.mxu0 %v2618_v35 }
  0x6f   :  { %1987 = vmatprep.subr.mxu1 %v3409_v0  ;;  %496 = vmatprep.subr.mxu0 %v2624_v37 }
  0x70   :  { %1988 = vmatpush3.msra.mxu1 %v2641_v42  ;;  %497 = vmatpush1.msra.mxu0 %v2628_v38 }
  0x71   :  { %1989 = vmatprep.subr.mxu1 %v3409_v0  ;;  %498 = vmatprep.subr.mxu0 %v2634_v40 }
  0x72   :  { %1990 = vmatpush3.msra.mxu1 %v2651_v45  ;;  %499 = vmatpush1.msra.mxu0 %v2638_v41 }
  0x73   :  { %1991 = vmatprep.subr.mxu1 %v3409_v0  ;;  %500 = vmatprep.subr.mxu0 %v2644_v43 }
  0x74   :  { %1992 = vmatpush3.msra.mxu1 %v2661_v48  ;;  %501 = vmatpush1.msra.mxu0 %v2648_v44 }
  0x75   :  { %1993 = vmatprep.subr.mxu1 %v3409_v0  ;;  %502 = vmatprep.subr.mxu0 %v2654_v46 }
  0x76   :  { %1994 = vmatpush3.msra.mxu1 %v2671_v51  ;;  %503 = vmatpush1.msra.mxu0 %v2658_v47 }
  0x77   :  { %1995 = vmatprep.subr.mxu1 %v3409_v0  ;;  %504 = vmatprep.subr.mxu0 %v2664_v49 }
  0x78   :  { %1996 = vmatpush3.msra.mxu1 %v2681_v54  ;;  %505 = vmatpush1.msra.mxu0 %v2668_v50 }
  0x79   :  { %1997 = vmatprep.subr.mxu1 %v3409_v0  ;;  %506 = vmatprep.subr.mxu0 %v2674_v52 }
  0x7a   :  { %1998 = vmatpush3.msra.mxu1 %v2691_v57  ;;  %507 = vmatpush1.msra.mxu0 %v2678_v53 }
  0x7b   :  { %1999 = vmatprep.subr.mxu1 %v3409_v0  ;;  %508 = vmatprep.subr.mxu0 %v2684_v55 }
  0x7c   :  { %2000 = vmatpush3.msra.mxu1 %v2701_v60  ;;  %509 = vmatpush1.msra.mxu0 %v2688_v56 }
  0x7d   :  { %2001 = vmatprep.subr.mxu1 %v3409_v0  ;;  %510 = vmatprep.subr.mxu0 %v2694_v58 }
  0x7e   :  { %2002 = vmatpush3.msra.mxu1 %v2711_v63  ;;  %511 = vmatpush1.msra.mxu0 %v2698_v59 }
  0x7f   :  { %2003 = vmatprep.subr.mxu1 %v3409_v0  ;;  %512 = vmatprep.subr.mxu0 %v2704_v61 }
  0x80   :  { %2004 = vmatpush3.msra.mxu1 %v2721_v3  ;;  %513 = vmatpush1.msra.mxu0 %v2708_v62 }
  0x81   :  { %2005 = vmatprep.subr.mxu1 %v3409_v0  ;;  %514 = vmatprep.subr.mxu0 %v2714_v1 }
  0x82   :  { %2006 = vmatpush3.msra.mxu1 %v2732_v5  ;;  %515 = vmatpush1.msra.mxu0 %v2718_v2 }
  0x83   :  { %2007 = vmatprep.subr.mxu1 %v3409_v0  ;;  %548 = vmatprep.mubr.f32.mxu0 %v3409_v0 }
  0x84   :  { %2008 = vmatpush3.msra.mxu1 %v2738_v6  ;;  %2011 = vmatprep.mubr.msk.f32.mxu1 %vm2470_vm0, %v3409_v0 }
  0x85   :  { %2009 = vmatprep.subr.mxu1 %v3409_v0  ;;  %663 = vmatprep.subr.mxu0 %v2563_v14 }
  0x86   :  { %2010 = vmatpush3.msra.mxu1 %v2744_v7 }
  0x87   :  { %2014 = vmatprep.subr.mxu1 %v3409_v0 }
 0x103   :  { %v266_v8 = vpop.f32.mrf.mxu1  ;;  %v195_v15 = vpop.f32.mrf.mxu0 }
 0x104   :  { %v2822_v19 = vadd.f32 %v195_v15, %v113_v16  ;;  %v120_v15 = vsub.s32 2, %v111_v11 }
 0x105   :  { %v1943_v9 = vpop.f32.mrf.mxu1  ;;  %v197_v18 = vpop.f32.mrf.mxu0 }
 0x106   :  { %v2825_v9 = vadd.f32 %v197_v18, %v117_v22 }
 0x108   :  { %3440 = vst [vmem:[#allocation25_spill] sm:$0xff] %v2825_v9 }
 0x123   :  { %v386_v21 = vpop.f32.mrf.mxu0 }
 0x124   :  { %v461_v25 = vadd.f32 %v386_v21, %v2822_v19  ;;  %v121_v21 = vrot.slane %v108_v13, %v120_v15  ;;  %v3443_v13 = vld [vmem:[#allocation21_spill] sm:$0xff]  ;;  %v3445_v15 = vld [vmem:[#allocation24_spill] sm:$0xff] }
 0x125   :  { %v388_v14 = vpop.f32.mrf.mxu0 }
 0x126   :  { %v1776_v0 = vmul.f32 -1.442695, %v461_v25  ;;  %v457_v10 = vpop.f32.mrf.mxu1  ;;  %v462_v7 = vadd.f32 %v388_v14, %v2825_v9  ;;  %v2834_v25 = vadd.f32 %v266_v8, %v121_v21  ;;  %v3441_v8 = vmov 0.0  }
 0x128   :  { %2233 = vpow2.f32 %v1776_v0  ;;  %v1978_v2 = vpop.f32.mrf.mxu1  ;;  %v1777_v1 = vmul.f32 -1.442695, %v462_v7  ;;  %v475_v0 = vadd.f32 %v457_v10, %v2831_v17  ;;  %v3444_v10 = vld [vmem:[#allocation22_spill] sm:$0xff] }
 0x12a   :  { %2235 = vpow2.f32 %v1777_v1 }
 0x135   :  { %v2234_v12 = vpop.eup %2233 }
 0x136   :  { %v469_v6 = vadd.f32 1.0, %v2234_v12 }
 0x137   :  { %v2236_v16 = vpop.eup %2235 }
 0x138   :  { %2237 = vrcp.f32 %v469_v6  ;;  %v470_v18 = vadd.f32 1.0, %v2236_v16  ;;  %v3446_v16 = vld [vmem:[#allocation18_spill] sm:$0xff] }
 0x13a   :  { %2239 = vrcp.f32 %v470_v18 }
 0x145   :  { %v2238_v22 = vpop.eup %2237 }
 0x146   :  { %v476_v14 = vmul.f32 %v2238_v22, %v475_v0 }
 0x147   :  { %v2240_v2 = vpop.eup %2239 }
 0x148   :  { %v477_v1 = vadd.f32 %v476_v14, %v2834_v25  ;;  %v479_v6 = vsub.f32 1.0, %v2240_v2  ;;  %v481_v12 = vmul.f32 %v2240_v2, %v2727_v4  ;;  %v3442_v4 = vld [vmem:[#allocation23_spill] sm:$0xff] }
 0x14a   :  { %2241 = vtanh.f32 %v477_v1 }
 0x157   :  { %v2242_v7 = vpop.eup %2241 }
 0x158   :  { %v480_v11 = vmul.f32 %v2242_v7, %v479_v6  ;;  %v3447_v7 = vld [vmem:[#allocation25_spill] sm:$0xff] }
 0x15a   :  { %v2838_v9 = vadd.f32 %v481_v12, %v480_v11 }
 0x15c   :  { %483 = vst [vmem:[#allocation10] sm:$0x1] %v2838_v9  ;;  %549 = vmatmul.mubr.f32.vlgmr.msra.gmra.mxu0 %v2838_v9  ;;  %2012 = vmatmul.mubr.f32.vlgmr.msra.gmra.mxu1 %v2838_v9 }
 0x15d   :  { %664 = vmatpush1.msra.mxu0 %v2578_v20  ;;  %2015 = vmatpush3.msra.mxu1 %v2601_v30 }
 0x15e   :  { %665 = vmatprep.subr.mxu0 %v2581_v23  ;;  %2016 = vmatprep.subr.mxu1 %v3441_v8 }
 0x15f   :  { %666 = vmatpush1.msra.mxu0 %v2584_v24  ;;  %2017 = vmatpush3.msra.mxu1 %v2611_v33 }
 0x160   :  { %667 = vmatprep.subr.mxu0 %v2588_v26  ;;  %2018 = vmatprep.subr.mxu1 %v3441_v8 }
 0x161   :  { %668 = vmatpush1.msra.mxu0 %v2591_v27  ;;  %2019 = vmatpush3.msra.mxu1 %v2621_v36 }
 0x162   :  { %669 = vmatprep.subr.mxu0 %v2595_v28  ;;  %2020 = vmatprep.subr.mxu1 %v3441_v8 }
 0x163   :  { %670 = vmatpush1.msra.mxu0 %v2598_v29  ;;  %2021 = vmatpush3.msra.mxu1 %v2631_v39 }
 0x164   :  { %671 = vmatprep.subr.mxu0 %v2604_v31  ;;  %2022 = vmatprep.subr.mxu1 %v3441_v8 }
 0x165   :  { %672 = vmatpush1.msra.mxu0 %v2608_v32  ;;  %2023 = vmatpush3.msra.mxu1 %v2641_v42 }
 0x166   :  { %673 = vmatprep.subr.mxu0 %v2614_v34  ;;  %2024 = vmatprep.subr.mxu1 %v3441_v8 }
 0x167   :  { %674 = vmatpush1.msra.mxu0 %v2618_v35  ;;  %2025 = vmatpush3.msra.mxu1 %v2651_v45 }
 0x168   :  { %675 = vmatprep.subr.mxu0 %v2624_v37  ;;  %2026 = vmatprep.subr.mxu1 %v3441_v8 }
 0x169   :  { %676 = vmatpush1.msra.mxu0 %v2628_v38  ;;  %2027 = vmatpush3.msra.mxu1 %v2661_v48 }
 0x16a   :  { %677 = vmatprep.subr.mxu0 %v2634_v40  ;;  %2028 = vmatprep.subr.mxu1 %v3441_v8 }
 0x16b   :  { %678 = vmatpush1.msra.mxu0 %v2638_v41  ;;  %2029 = vmatpush3.msra.mxu1 %v2671_v51 }
 0x16c   :  { %679 = vmatprep.subr.mxu0 %v2644_v43  ;;  %2030 = vmatprep.subr.mxu1 %v3441_v8 }
 0x16d   :  { %680 = vmatpush1.msra.mxu0 %v2648_v44  ;;  %2031 = vmatpush3.msra.mxu1 %v2681_v54 }
 0x16e   :  { %681 = vmatprep.subr.mxu0 %v2654_v46  ;;  %2032 = vmatprep.subr.mxu1 %v3441_v8 }
 0x16f   :  { %682 = vmatpush1.msra.mxu0 %v2658_v47  ;;  %2033 = vmatpush3.msra.mxu1 %v2691_v57 }
 0x170   :  { %683 = vmatprep.subr.mxu0 %v2664_v49  ;;  %2034 = vmatprep.subr.mxu1 %v3441_v8 }
 0x171   :  { %684 = vmatpush1.msra.mxu0 %v2668_v50  ;;  %2035 = vmatpush3.msra.mxu1 %v2701_v60 }
 0x172   :  { %685 = vmatprep.subr.mxu0 %v2674_v52  ;;  %2036 = vmatprep.subr.mxu1 %v3441_v8 }
 0x173   :  { %686 = vmatpush1.msra.mxu0 %v2678_v53  ;;  %2037 = vmatpush3.msra.mxu1 %v2711_v63 }
 0x174   :  { %687 = vmatprep.subr.mxu0 %v2684_v55  ;;  %2038 = vmatprep.subr.mxu1 %v3441_v8 }
 0x175   :  { %688 = vmatpush1.msra.mxu0 %v2688_v56  ;;  %2039 = vmatpush3.msra.mxu1 %v2721_v3 }
 0x176   :  { %689 = vmatprep.subr.mxu0 %v2694_v58  ;;  %2040 = vmatprep.subr.mxu1 %v3441_v8 }
 0x177   :  { %690 = vmatpush1.msra.mxu0 %v2698_v59  ;;  %2041 = vmatpush3.msra.mxu1 %v2732_v5 }
 0x178   :  { %691 = vmatprep.subr.mxu0 %v2704_v61  ;;  %2042 = vmatprep.subr.mxu1 %v3441_v8 }
 0x179   :  { %692 = vmatpush1.msra.mxu0 %v2708_v62  ;;  %2043 = vmatpush3.msra.mxu1 %v3442_v4 }
 0x17a   :  { %693 = vmatprep.subr.mxu0 %v3443_v13  ;;  %2044 = vmatprep.subr.mxu1 %v3441_v8 }
 0x17b   :  { %694 = vmatpush1.msra.mxu0 %v3444_v10  ;;  %727 = vmatprep.mubr.f32.mxu0 %v3441_v8 }
 0x17c   :  { %2045 = vmatpush3.msra.mxu1 %v3445_v15  ;;  %2046 = vmatprep.mubr.msk.f32.mxu1 %vm2470_vm0, %v3441_v8 }
 0x17d   :  { %841 = vmatprep.subr.mxu0 %v3446_v16  ;;  %2049 = vmatprep.subr.mxu1 %v3441_v8 }
 0x21c   :  { %v550_v21 = vpop.f32.mrf.mxu0  ;;  %v621_v18 = vpop.f32.mrf.mxu1 }
 0x21d   :  { %v627_v0 = vrot.slane %v550_v21, 7  ;;  %v645_v13 = vadd.f32 %v621_v18, %v2831_v17  ;;  %v3454_v18 = vld [vmem:[#allocation18_spill] sm:$0xff] }
 0x21e   :  { %v552_v22 = vpop.f32.mrf.mxu0  ;;  %v2013_v14 = vpop.f32.mrf.mxu1 }
 0x21f   :  { %v631_v1 = vadd.f32 %v627_v0, %v2822_v19  ;;  %v628_v6 = vrot.slane %v552_v22, 7  ;;  %v647_v62 = vrot.slane %v645_v13, 7  ;;  %v655_v14 = vrot.slane %v2838_v9, 7  ;;  %v3450_v9 = vld [vmem:[#allocation23_spill] sm:$0xff]  ;;  %v3452_v13 = vld [vmem:[#allocation22_spill] sm:$0xff] }
 0x221   :  { %v1778_v2 = vmul.f32 -1.442695, %v631_v1  ;;  %v632_v11 = vadd.f32 %v628_v6, %v3447_v7 }
 0x223   :  { %2243 = vpow2.f32 %v1778_v2  ;;  %v1779_v12 = vmul.f32 -1.442695, %v632_v11 }
 0x225   :  { %2245 = vpow2.f32 %v1779_v12 }
 0x230   :  { %v2244_v15 = vpop.eup %2243 }
 0x231   :  { %v639_v10 = vadd.f32 1.0, %v2244_v15 }
 0x232   :  { %v2246_v16 = vpop.eup %2245 }
 0x233   :  { %2247 = vrcp.f32 %v639_v10  ;;  %v640_v4 = vadd.f32 1.0, %v2246_v16  ;;  %v3453_v16 = vld [vmem:[#allocation24_spill] sm:$0xff] }
 0x235   :  { %2249 = vrcp.f32 %v640_v4  ;;  %v3451_v4 = vld [vmem:[#allocation21_spill] sm:$0xff] }
 0x240   :  { %v2248_v21 = vpop.eup %2247 }
 0x241   :  { %v649_v61 = vmul.f32 %v2248_v21, %v647_v62  ;;  %v3449_v62 = vld [vmem:[#allocation20_spill] sm:$0xff] }
 0x242   :  { %v2250_v22 = vpop.eup %2249 }
 0x243   :  { %v650_v0 = vadd.f32 %v649_v61, %v2834_v25  ;;  %v652_v1 = vsub.f32 1.0, %v2250_v22  ;;  %v657_v11 = vmul.f32 %v2250_v22, %v655_v14  ;;  %v3448_v61 = vld [vmem:[#allocation19_spill] sm:$0xff] }
 0x245   :  { %2251 = vtanh.f32 %v650_v0 }
 0x252   :  { %v2252_v2 = vpop.eup %2251 }
 0x253   :  { %v653_v6 = vmul.f32 %v2252_v2, %v652_v1 }
 0x255   :  { %v2915_v15 = vadd.f32 %v657_v11, %v653_v6 }
 0x257   :  { %659 = vst [vmem:[#allocation10] sm:$0x2] %v2915_v15  ;;  %v661_v10 = vrot.slane %v2915_v15, 1 }
 0x259   :  { %728 = vmatmul.mubr.f32.vlgmr.msra.gmra.mxu0 %v661_v10  ;;  %2047 = vmatmul.mubr.f32.vlgmr.msra.gmra.mxu1 %v661_v10 }
 0x25a   :  { %842 = vmatpush1.msra.mxu0 %v2578_v20  ;;  %2050 = vmatpush3.msra.mxu1 %v2601_v30 }
 0x25b   :  { %843 = vmatprep.subr.mxu0 %v2581_v23  ;;  %2051 = vmatprep.subr.mxu1 %v3441_v8 }
 0x25c   :  { %844 = vmatpush1.msra.mxu0 %v2584_v24  ;;  %2052 = vmatpush3.msra.mxu1 %v2611_v33 }
 0x25d   :  { %845 = vmatprep.subr.mxu0 %v2588_v26  ;;  %2053 = vmatprep.subr.mxu1 %v3441_v8 }
 0x25e   :  { %846 = vmatpush1.msra.mxu0 %v2591_v27  ;;  %2054 = vmatpush3.msra.mxu1 %v2621_v36 }
 0x25f   :  { %847 = vmatprep.subr.mxu0 %v2595_v28  ;;  %2055 = vmatprep.subr.mxu1 %v3441_v8 }
 0x260   :  { %848 = vmatpush1.msra.mxu0 %v2598_v29  ;;  %2056 = vmatpush3.msra.mxu1 %v2631_v39 }
 0x261   :  { %849 = vmatprep.subr.mxu0 %v2604_v31  ;;  %2057 = vmatprep.subr.mxu1 %v3441_v8 }
 0x262   :  { %850 = vmatpush1.msra.mxu0 %v2608_v32  ;;  %2058 = vmatpush3.msra.mxu1 %v2641_v42 }
 0x263   :  { %851 = vmatprep.subr.mxu0 %v2614_v34  ;;  %2059 = vmatprep.subr.mxu1 %v3441_v8 }
 0x264   :  { %852 = vmatpush1.msra.mxu0 %v2618_v35  ;;  %2060 = vmatpush3.msra.mxu1 %v2651_v45 }
 0x265   :  { %853 = vmatprep.subr.mxu0 %v2624_v37  ;;  %2061 = vmatprep.subr.mxu1 %v3441_v8 }
 0x266   :  { %854 = vmatpush1.msra.mxu0 %v2628_v38  ;;  %2062 = vmatpush3.msra.mxu1 %v2661_v48 }
 0x267   :  { %855 = vmatprep.subr.mxu0 %v2634_v40  ;;  %2063 = vmatprep.subr.mxu1 %v3441_v8 }
 0x268   :  { %856 = vmatpush1.msra.mxu0 %v2638_v41  ;;  %2064 = vmatpush3.msra.mxu1 %v2671_v51 }
 0x269   :  { %857 = vmatprep.subr.mxu0 %v2644_v43  ;;  %2065 = vmatprep.subr.mxu1 %v3441_v8 }
 0x26a   :  { %858 = vmatpush1.msra.mxu0 %v2648_v44  ;;  %2066 = vmatpush3.msra.mxu1 %v2681_v54 }
 0x26b   :  { %859 = vmatprep.subr.mxu0 %v2654_v46  ;;  %2067 = vmatprep.subr.mxu1 %v3441_v8 }
 0x26c   :  { %860 = vmatpush1.msra.mxu0 %v2658_v47  ;;  %2068 = vmatpush3.msra.mxu1 %v2691_v57 }
 0x26d   :  { %861 = vmatprep.subr.mxu0 %v2664_v49  ;;  %2069 = vmatprep.subr.mxu1 %v3441_v8 }
 0x26e   :  { %862 = vmatpush1.msra.mxu0 %v2668_v50  ;;  %2070 = vmatpush3.msra.mxu1 %v2701_v60 }
 0x26f   :  { %863 = vmatprep.subr.mxu0 %v2674_v52  ;;  %2071 = vmatprep.subr.mxu1 %v3441_v8 }
 0x270   :  { %864 = vmatpush1.msra.mxu0 %v2678_v53  ;;  %2072 = vmatpush3.msra.mxu1 %v2711_v63 }
 0x271   :  { %865 = vmatprep.subr.mxu0 %v2684_v55  ;;  %2073 = vmatprep.subr.mxu1 %v3441_v8 }
 0x272   :  { %866 = vmatpush1.msra.mxu0 %v2688_v56  ;;  %2074 = vmatpush3.msra.mxu1 %v2721_v3 }
 0x273   :  { %867 = vmatprep.subr.mxu0 %v2694_v58  ;;  %2075 = vmatprep.subr.mxu1 %v3441_v8 }
 0x274   :  { %868 = vmatpush1.msra.mxu0 %v2698_v59  ;;  %2076 = vmatpush3.msra.mxu1 %v2732_v5 }
 0x275   :  { %869 = vmatprep.subr.mxu0 %v3448_v61  ;;  %2077 = vmatprep.subr.mxu1 %v3441_v8 }
 0x276   :  { %870 = vmatpush1.msra.mxu0 %v3449_v62  ;;  %2078 = vmatpush3.msra.mxu1 %v3450_v9 }
 0x277   :  { %871 = vmatprep.subr.mxu0 %v3451_v4  ;;  %2079 = vmatprep.subr.mxu1 %v3441_v8 }
 0x278   :  { %872 = vmatpush1.msra.mxu0 %v3452_v13  ;;  %905 = vmatprep.mubr.f32.mxu0 %v3441_v8 }
 0x279   :  { %2080 = vmatpush3.msra.mxu1 %v3453_v16  ;;  %2081 = vmatprep.mubr.msk.f32.mxu1 %vm2470_vm0, %v3441_v8 }
 0x27a   :  { %1019 = vmatprep.subr.mxu0 %v3454_v18  ;;  %2084 = vmatprep.subr.mxu1 %v3441_v8 }
 0x319   :  { %v729_v12 = vpop.f32.mrf.mxu0  ;;  %v800_v21 = vpop.f32.mrf.mxu1 }
 0x31a   :  { %v806_v0 = vrot.slane %v729_v12, 6  ;;  %v824_v4 = vadd.f32 %v800_v21, %v2831_v17 }
 0x31b   :  { %v731_v22 = vpop.f32.mrf.mxu0  ;;  %v2048_v14 = vpop.f32.mrf.mxu1 }
 0x31c   :  { %v810_v1 = vadd.f32 %v806_v0, %v2822_v19  ;;  %v807_v6 = vrot.slane %v731_v22, 6  ;;  %v826_v62 = vrot.slane %v824_v4, 6 }
 0x31e   :  { %v1780_v2 = vmul.f32 -1.442695, %v810_v1  ;;  %v811_v11 = vadd.f32 %v807_v6, %v3447_v7  ;;  %v833_v1 = vrot.slane %v2915_v15, 7 }
 0x320   :  { %2253 = vpow2.f32 %v1780_v2  ;;  %v1781_v10 = vmul.f32 -1.442695, %v811_v11 }
 0x322   :  { %2255 = vpow2.f32 %v1781_v10 }
 0x32d   :  { %v2254_v16 = vpop.eup %2253 }
 0x32e   :  { %v818_v13 = vadd.f32 1.0, %v2254_v16 }
 0x32f   :  { %v2256_v18 = vpop.eup %2255 }
 0x330   :  { %2257 = vrcp.f32 %v818_v13  ;;  %v819_v9 = vadd.f32 1.0, %v2256_v18  ;;  %v3073_v18 = vld [vmem:[#allocation8 + $0x168] sm:$0xff] }
 0x332   :  { %2259 = vrcp.f32 %v819_v9 }
 0x33d   :  { %v2258_v12 = vpop.eup %2257 }
 0x33e   :  { %v828_v61 = vmul.f32 %v2258_v12, %v826_v62  ;;  %v3076_v12 = vld [vmem:[#allocation8 + $0x178] sm:$0xff] }
 0x33f   :  { %v2260_v22 = vpop.eup %2259 }
 0x340   :  { %v829_v0 = vadd.f32 %v828_v61, %v2834_v25  ;;  %v831_v14 = vsub.f32 1.0, %v2260_v22  ;;  %v835_v11 = vmul.f32 %v2260_v22, %v833_v1  ;;  %v3083_v22 = vld [vmem:[#allocation8 + $0x150] sm:$0xff]  ;;  %v3089_v1 = vld [vmem:[#allocation8 + $0x140] sm:$0xff] }
 0x342   :  { %2261 = vtanh.f32 %v829_v0  ;;  %v3079_v0 = vld [vmem:[#allocation8 + $0x158] sm:$0xff] }
 0x34f   :  { %v2262_v2 = vpop.eup %2261 }
 0x350   :  { %v832_v6 = vmul.f32 %v2262_v2, %v831_v14  ;;  %v3086_v14 = vld [vmem:[#allocation8 + $0x160] sm:$0xff]  ;;  %v3093_v2 = vld [vmem:[#allocation8 + $0x138] sm:$0xff] }
 0x352   :  { %v2991_v16 = vadd.f32 %v835_v11, %v832_v6  ;;  %v3096_v6 = vld [vmem:[#allocation8 + $0x148] sm:$0xff] }
 0x353   :  { %v3099_v11 = vld [vmem:[#allocation8 + $0x128] sm:$0xff] }
 0x354   :  { %837 = vst [vmem:[#allocation10] sm:$0x4] %v2991_v16  ;;  %v839_v13 = vrot.slane %v2991_v16, 2  ;;  %v1011_v61 = vrot.slane %v2991_v16, 7  ;;  %v3103_v16 = vld [vmem:[#allocation8 + $0x120] sm:$0xff] }
 0x356   :  { %906 = vmatmul.mubr.f32.vlgmr.msra.gmra.mxu0 %v839_v13  ;;  %2082 = vmatmul.mubr.f32.vlgmr.msra.gmra.mxu1 %v839_v13  ;;  %v3106_v13 = vld [vmem:[#allocation8 + $0x130] sm:$0xff] }
 0x357   :  { %1020 = vmatpush1.msra.mxu0 %v2578_v20  ;;  %2085 = vmatpush3.msra.mxu1 %v2601_v30  ;;  %v3455_v20 = vld [vmem:[#allocation19_spill] sm:$0xff] }
 0x358   :  { %1021 = vmatprep.subr.mxu0 %v2581_v23  ;;  %2086 = vmatprep.subr.mxu1 %v3441_v8  ;;  %v3456_v23 = vld [vmem:[#allocation20_spill] sm:$0xff] }
 0x359   :  { %1022 = vmatpush1.msra.mxu0 %v2584_v24  ;;  %2087 = vmatpush3.msra.mxu1 %v2611_v33  ;;  %v3457_v24 = vld [vmem:[#allocation23_spill] sm:$0xff] }
 0x35a   :  { %1023 = vmatprep.subr.mxu0 %v2588_v26  ;;  %2088 = vmatprep.subr.mxu1 %v3441_v8  ;;  %v3458_v26 = vld [vmem:[#allocation21_spill] sm:$0xff] }
 0x35b   :  { %1024 = vmatpush1.msra.mxu0 %v2591_v27  ;;  %2089 = vmatpush3.msra.mxu1 %v2621_v36  ;;  %v3459_v27 = vld [vmem:[#allocation22_spill] sm:$0xff] }
 0x35c   :  { %1025 = vmatprep.subr.mxu0 %v2595_v28  ;;  %2090 = vmatprep.subr.mxu1 %v3441_v8  ;;  %v3460_v28 = vld [vmem:[#allocation24_spill] sm:$0xff] }
 0x35d   :  { %1026 = vmatpush1.msra.mxu0 %v2598_v29  ;;  %2091 = vmatpush3.msra.mxu1 %v2631_v39  ;;  %v3060_v29 = vld [vmem:[#allocation8 + $0x170] sm:$0xff] }
 0x35e   :  { %1027 = vmatprep.subr.mxu0 %v2604_v31  ;;  %2092 = vmatprep.subr.mxu1 %v3441_v8 }
 0x35f   :  { %1028 = vmatpush1.msra.mxu0 %v2608_v32  ;;  %2093 = vmatpush3.msra.mxu1 %v2641_v42 }
 0x360   :  { %1029 = vmatprep.subr.mxu0 %v2614_v34  ;;  %2094 = vmatprep.subr.mxu1 %v3441_v8 }
 0x361   :  { %1030 = vmatpush1.msra.mxu0 %v2618_v35  ;;  %2095 = vmatpush3.msra.mxu1 %v2651_v45 }
 0x362   :  { %1031 = vmatprep.subr.mxu0 %v2624_v37  ;;  %2096 = vmatprep.subr.mxu1 %v3441_v8 }
 0x363   :  { %1032 = vmatpush1.msra.mxu0 %v2628_v38  ;;  %2097 = vmatpush3.msra.mxu1 %v2661_v48 }
 0x364   :  { %1033 = vmatprep.subr.mxu0 %v2634_v40  ;;  %2098 = vmatprep.subr.mxu1 %v3441_v8 }
 0x365   :  { %1034 = vmatpush1.msra.mxu0 %v2638_v41  ;;  %2099 = vmatpush3.msra.mxu1 %v2671_v51 }
 0x366   :  { %1035 = vmatprep.subr.mxu0 %v2644_v43  ;;  %2100 = vmatprep.subr.mxu1 %v3441_v8 }
 0x367   :  { %1036 = vmatpush1.msra.mxu0 %v2648_v44  ;;  %2101 = vmatpush3.msra.mxu1 %v2681_v54 }
 0x368   :  { %1037 = vmatprep.subr.mxu0 %v2654_v46  ;;  %2102 = vmatprep.subr.mxu1 %v3441_v8 }
 0x369   :  { %1038 = vmatpush1.msra.mxu0 %v2658_v47  ;;  %2103 = vmatpush3.msra.mxu1 %v2691_v57 }
 0x36a   :  { %1039 = vmatprep.subr.mxu0 %v2664_v49  ;;  %2104 = vmatprep.subr.mxu1 %v3441_v8 }
 0x36b   :  { %1040 = vmatpush1.msra.mxu0 %v2668_v50  ;;  %2105 = vmatpush3.msra.mxu1 %v2701_v60 }
 0x36c   :  { %1041 = vmatprep.subr.mxu0 %v2674_v52  ;;  %2106 = vmatprep.subr.mxu1 %v3441_v8 }
 0x36d   :  { %1042 = vmatpush1.msra.mxu0 %v2678_v53  ;;  %2107 = vmatpush3.msra.mxu1 %v2711_v63 }
 0x36e   :  { %1043 = vmatprep.subr.mxu0 %v2684_v55  ;;  %2108 = vmatprep.subr.mxu1 %v3441_v8 }
 0x36f   :  { %1044 = vmatpush1.msra.mxu0 %v2688_v56  ;;  %2109 = vmatpush3.msra.mxu1 %v2721_v3 }
 0x370   :  { %1045 = vmatprep.subr.mxu0 %v2694_v58  ;;  %2110 = vmatprep.subr.mxu1 %v3441_v8 }
 0x371   :  { %1046 = vmatpush1.msra.mxu0 %v2698_v59  ;;  %2111 = vmatpush3.msra.mxu1 %v2732_v5 }
 0x372   :  { %1047 = vmatprep.subr.mxu0 %v3455_v20  ;;  %2112 = vmatprep.subr.mxu1 %v3441_v8 }
 0x373   :  { %1048 = vmatpush1.msra.mxu0 %v3456_v23  ;;  %2113 = vmatpush3.msra.mxu1 %v3457_v24 }
 0x374   :  { %1049 = vmatprep.subr.mxu0 %v3458_v26  ;;  %2114 = vmatprep.subr.mxu1 %v3441_v8 }
 0x375   :  { %1050 = vmatpush1.msra.mxu0 %v3459_v27  ;;  %1083 = vmatprep.mubr.f32.mxu0 %v3441_v8 }
 0x376   :  { %2115 = vmatpush3.msra.mxu1 %v3460_v28  ;;  %2116 = vmatprep.mubr.msk.f32.mxu1 %vm2470_vm0, %v3441_v8 }
 0x377   :  { %1197 = vmatprep.subr.mxu0 %v3060_v29  ;;  %2119 = vmatprep.subr.mxu1 %v3441_v8 }
 0x416   :  { %v907_v30 = vpop.f32.mrf.mxu0  ;;  %v978_v31 = vpop.f32.mrf.mxu1 }
 0x417   :  { %v984_v32 = vrot.slane %v907_v30, 5  ;;  %v1002_v44 = vadd.f32 %v978_v31, %v2831_v17  ;;  %v3109_v30 = vld [vmem:[#allocation8 + $0x110] sm:$0xff]  ;;  %v3113_v31 = vld [vmem:[#allocation8 + $0x108] sm:$0xff] }
 0x418   :  { %v909_v33 = vpop.f32.mrf.mxu0  ;;  %v2083_v34 = vpop.f32.mrf.mxu1 }
 0x419   :  { %v988_v35 = vadd.f32 %v984_v32, %v2822_v19  ;;  %v985_v37 = vrot.slane %v909_v33, 5  ;;  %v1004_v47 = vrot.slane %v1002_v44, 5  ;;  %v3117_v32 = vld [vmem:[#allocation8 + $0xf8] sm:$0xff]  ;;  %v3121_v33 = vld [vmem:[#allocation8 + $0xf0] sm:$0xff]  ;;  %v3125_v34 = vld [vmem:[#allocation8 + $0xe0] sm:$0xff] }
 0x41b   :  { %v1782_v36 = vmul.f32 -1.442695, %v988_v35  ;;  %v989_v38 = vadd.f32 %v985_v37, %v3447_v7  ;;  %v3129_v35 = vld [vmem:[#allocation8 + $0xd8] sm:$0xff]  ;;  %v3145_v37 = vld [vmem:[#allocation8 + $0xa8] sm:$0xff] }
 0x41d   :  { %2263 = vpow2.f32 %v1782_v36  ;;  %v1783_v39 = vmul.f32 -1.442695, %v989_v38  ;;  %v3137_v36 = vld [vmem:[#allocation8 + $0xc0] sm:$0xff]  ;;  %v3153_v38 = vld [vmem:[#allocation8 + $0x90] sm:$0xff] }
 0x41f   :  { %2265 = vpow2.f32 %v1783_v39  ;;  %v3161_v39 = vld [vmem:[#allocation8 + $0x78] sm:$0xff] }
 0x42a   :  { %v2264_v40 = vpop.eup %2263 }
 0x42b   :  { %v996_v41 = vadd.f32 1.0, %v2264_v40  ;;  %v3169_v40 = vld [vmem:[#allocation8 + $0x60] sm:$0xff] }
 0x42c   :  { %v2266_v43 = vpop.eup %2265 }
 0x42d   :  { %2267 = vrcp.f32 %v996_v41  ;;  %v997_v46 = vadd.f32 1.0, %v2266_v43 }
 0x42f   :  { %2269 = vrcp.f32 %v997_v46 }
 0x43a   :  { %v2268_v49 = vpop.eup %2267 }
 0x43b   :  { %v1006_v50 = vmul.f32 %v2268_v49, %v1004_v47 }
 0x43c   :  { %v2270_v53 = vpop.eup %2269 }
 0x43d   :  { %v1007_v52 = vadd.f32 %v1006_v50, %v2834_v25  ;;  %v1009_v15 = vsub.f32 1.0, %v2270_v53  ;;  %v1013_v4 = vmul.f32 %v2270_v53, %v1011_v61 }
 0x43f   :  { %2271 = vtanh.f32 %v1007_v52 }
 0x44c   :  { %v2272_v62 = vpop.eup %2271 }
 0x44d   :  { %v1010_v9 = vmul.f32 %v2272_v62, %v1009_v15 }
 0x44f   :  { %v3069_v21 = vadd.f32 %v1013_v4, %v1010_v9  ;;  %v3220_v9 = vld [vmem:[#allocation8 + $0x118] sm:$0xff]  ;;  %v3226_v4 = vld [vmem:[#allocation8 + $0x100] sm:$0xff] }
 0x451   :  { %1015 = vst [vmem:[#allocation10] sm:$0x8] %v3069_v21  ;;  %v1017_v10 = vrot.slane %v3069_v21, 3  ;;  %v1189_v50 = vrot.slane %v3069_v21, 7  ;;  %v3232_v21 = vld [vmem:[#allocation8 + $0xe8] sm:$0xff] }
 0x453   :  { %1084 = vmatmul.mubr.f32.vlgmr.msra.gmra.mxu0 %v1017_v10  ;;  %2117 = vmatmul.mubr.f32.vlgmr.msra.gmra.mxu1 %v1017_v10  ;;  %v3238_v10 = vld [vmem:[#allocation8 + $0xd0] sm:$0xff] }
 0x454   :  { %1198 = vmatpush1.msra.mxu0 %v3073_v18  ;;  %2120 = vmatpush3.msra.mxu1 %v3076_v12 }
 0x455   :  { %1199 = vmatprep.subr.mxu0 %v3079_v0  ;;  %2121 = vmatprep.subr.mxu1 %v3441_v8 }
 0x456   :  { %1200 = vmatpush1.msra.mxu0 %v3083_v22  ;;  %2122 = vmatpush3.msra.mxu1 %v3086_v14 }
 0x457   :  { %1201 = vmatprep.subr.mxu0 %v3089_v1  ;;  %2123 = vmatprep.subr.mxu1 %v3441_v8 }
 0x458   :  { %1202 = vmatpush1.msra.mxu0 %v3093_v2  ;;  %2124 = vmatpush3.msra.mxu1 %v3096_v6 }
 0x459   :  { %1203 = vmatprep.subr.mxu0 %v3099_v11  ;;  %2125 = vmatprep.subr.mxu1 %v3441_v8 }
 0x45a   :  { %1204 = vmatpush1.msra.mxu0 %v3103_v16  ;;  %2126 = vmatpush3.msra.mxu1 %v3106_v13 }
 0x45b   :  { %1205 = vmatprep.subr.mxu0 %v3109_v30  ;;  %2127 = vmatprep.subr.mxu1 %v3441_v8 }
 0x45c   :  { %1206 = vmatpush1.msra.mxu0 %v3113_v31  ;;  %2128 = vmatpush3.msra.mxu1 %v2641_v42  ;;  %v3133_v42 = vld [vmem:[#allocation8 + $0xc8] sm:$0xff] }
 0x45d   :  { %1207 = vmatprep.subr.mxu0 %v3117_v32  ;;  %2129 = vmatprep.subr.mxu1 %v3441_v8 }
 0x45e   :  { %1208 = vmatpush1.msra.mxu0 %v3121_v33  ;;  %2130 = vmatpush3.msra.mxu1 %v2651_v45  ;;  %v3141_v45 = vld [vmem:[#allocation8 + $0xb0] sm:$0xff] }
 0x45f   :  { %1209 = vmatprep.subr.mxu0 %v3125_v34  ;;  %2131 = vmatprep.subr.mxu1 %v3441_v8 }
 0x460   :  { %1210 = vmatpush1.msra.mxu0 %v3129_v35  ;;  %2132 = vmatpush3.msra.mxu1 %v2661_v48  ;;  %v3149_v48 = vld [vmem:[#allocation8 + $0x98] sm:$0xff] }
 0x461   :  { %1211 = vmatprep.subr.mxu0 %v3133_v42  ;;  %2133 = vmatprep.subr.mxu1 %v3441_v8 }
 0x462   :  { %1212 = vmatpush1.msra.mxu0 %v3137_v36  ;;  %2134 = vmatpush3.msra.mxu1 %v2671_v51  ;;  %v3157_v51 = vld [vmem:[#allocation8 + $0x80] sm:$0xff] }
 0x463   :  { %1213 = vmatprep.subr.mxu0 %v3141_v45  ;;  %2135 = vmatprep.subr.mxu1 %v3441_v8 }
 0x464   :  { %1214 = vmatpush1.msra.mxu0 %v3145_v37  ;;  %2136 = vmatpush3.msra.mxu1 %v2681_v54  ;;  %v3165_v54 = vld [vmem:[#allocation8 + $0x68] sm:$0xff] }
 0x465   :  { %1215 = vmatprep.subr.mxu0 %v3149_v48  ;;  %2137 = vmatprep.subr.mxu1 %v3441_v8 }
 0x466   :  { %1216 = vmatpush1.msra.mxu0 %v3153_v38  ;;  %2138 = vmatpush3.msra.mxu1 %v2691_v57 }
 0x467   :  { %1217 = vmatprep.subr.mxu0 %v3157_v51  ;;  %2139 = vmatprep.subr.mxu1 %v3441_v8 }
 0x468   :  { %1218 = vmatpush1.msra.mxu0 %v3161_v39  ;;  %2140 = vmatpush3.msra.mxu1 %v2701_v60 }
 0x469   :  { %1219 = vmatprep.subr.mxu0 %v3165_v54  ;;  %2141 = vmatprep.subr.mxu1 %v3441_v8 }
 0x46a   :  { %1220 = vmatpush1.msra.mxu0 %v3169_v40  ;;  %2142 = vmatpush3.msra.mxu1 %v2711_v63 }
 0x46b   :  { %1221 = vmatprep.subr.mxu0 %v2684_v55  ;;  %2143 = vmatprep.subr.mxu1 %v3441_v8 }
 0x46c   :  { %1222 = vmatpush1.msra.mxu0 %v2688_v56  ;;  %2144 = vmatpush3.msra.mxu1 %v2721_v3 }
 0x46d   :  { %1223 = vmatprep.subr.mxu0 %v2694_v58  ;;  %2145 = vmatprep.subr.mxu1 %v3441_v8 }
 0x46e   :  { %1224 = vmatpush1.msra.mxu0 %v2698_v59  ;;  %2146 = vmatpush3.msra.mxu1 %v2732_v5 }
 0x46f   :  { %1225 = vmatprep.subr.mxu0 %v3455_v20  ;;  %2147 = vmatprep.subr.mxu1 %v3441_v8 }
 0x470   :  { %1226 = vmatpush1.msra.mxu0 %v3456_v23  ;;  %2148 = vmatpush3.msra.mxu1 %v3457_v24 }
 0x471   :  { %1227 = vmatprep.subr.mxu0 %v3458_v26  ;;  %2149 = vmatprep.subr.mxu1 %v3441_v8 }
 0x472   :  { %1228 = vmatpush1.msra.mxu0 %v3459_v27  ;;  %1261 = vmatprep.mubr.f32.mxu0 %v3441_v8 }
 0x473   :  { %2150 = vmatpush3.msra.mxu1 %v3460_v28  ;;  %2151 = vmatprep.mubr.msk.f32.mxu1 %vm2470_vm0, %v3441_v8 }
 0x474   :  { %1375 = vmatprep.subr.mxu0 %v3060_v29  ;;  %2154 = vmatprep.subr.mxu1 %v3441_v8 }
 0x513   :  { %v1085_v55 = vpop.f32.mrf.mxu0  ;;  %v1156_v56 = vpop.f32.mrf.mxu1 }
 0x514   :  { %v1162_v57 = vrot.slane %v1085_v55, 4  ;;  %v1180_v27 = vadd.f32 %v1156_v56, %v2831_v17  ;;  %v3244_v55 = vld [vmem:[#allocation8 + $0xb8] sm:$0xff]  ;;  %v3250_v56 = vld [vmem:[#allocation8 + $0xa0] sm:$0xff] }
 0x515   :  { %v1087_v58 = vpop.f32.mrf.mxu0  ;;  %v2118_v59 = vpop.f32.mrf.mxu1 }
 0x516   :  { %v1166_v60 = vadd.f32 %v1162_v57, %v2822_v19  ;;  %v1163_v3 = vrot.slane %v1087_v58, 4  ;;  %v1182_v41 = vrot.slane %v1180_v27, 4  ;;  %v3256_v57 = vld [vmem:[#allocation8 + $0x88] sm:$0xff]  ;;  %v3262_v58 = vld [vmem:[#allocation8 + $0x70] sm:$0xff] }
 0x517   :  { %v3265_v59 = vld [vmem:[#allocation8 + $0x50] sm:$0xff]  ;;  %v3295_v27 = vld [vmem:[#allocation8 + $0x8] sm:$0xff] }
 0x518   :  { %v1784_v63 = vmul.f32 -1.442695, %v1166_v60  ;;  %v1167_v5 = vadd.f32 %v1163_v3, %v3447_v7  ;;  %v3269_v60 = vld [vmem:[#allocation8 + $0x48] sm:$0xff]  ;;  %v3275_v3 = vld [vmem:[#allocation8 + $0x38] sm:$0xff]  ;;  %3464 = vst [vmem:[#allocation20_spill] sm:$0xff] %v3295_v27 }
 0x51a   :  { %2273 = vpow2.f32 %v1784_v63  ;;  %v1785_v20 = vmul.f32 -1.442695, %v1167_v5  ;;  %v3272_v63 = vld [vmem:[#allocation8 + $0x58] sm:$0xff]  ;;  %v3279_v5 = vld [vmem:[#allocation8 + $0x30] sm:$0xff] }
 0x51c   :  { %2275 = vpow2.f32 %v1785_v20  ;;  %v3282_v20 = vld [vmem:[#allocation8 + $0x40] sm:$0xff] }
 0x527   :  { %v2274_v23 = vpop.eup %2273 }
 0x528   :  { %v1174_v24 = vadd.f32 1.0, %v2274_v23  ;;  %v3285_v23 = vld [vmem:[#allocation8 + $0x20] sm:$0xff] }
 0x529   :  { %v2276_v26 = vpop.eup %2275  ;;  %3461 = vst [vmem:[#allocation25_spill] sm:$0xff] %v3285_v23 }
 0x52a   :  { %2277 = vrcp.f32 %v1174_v24  ;;  %v1175_v28 = vadd.f32 1.0, %v2276_v26  ;;  %v3289_v24 = vld [vmem:[#allocation8 + $0x18] sm:$0xff]  ;;  %v3292_v26 = vld [vmem:[#allocation8 + $0x28] sm:$0xff] }
 0x52b   :  { %3462 = vst [vmem:[#allocation18_spill] sm:$0xff] %v3289_v24  ;;  %3463 = vst [vmem:[#allocation19_spill] sm:$0xff] %v3292_v26 }
 0x52c   :  { %2279 = vrcp.f32 %v1175_v28  ;;  %v3299_v28 = vld [vmem:[#allocation8] sm:$0xff] }
 0x52d   :  { %3465 = vst [vmem:[#allocation23_spill] sm:$0xff] %v3299_v28 }
 0x537   :  { %v2278_v43 = vpop.eup %2277 }
 0x538   :  { %v1184_v44 = vmul.f32 %v2278_v43, %v1182_v41  ;;  %v3303_v41 = vld [vmem:[#allocation8 + $0x10] sm:$0xff] }
 0x539   :  { %v2280_v47 = vpop.eup %2279  ;;  %3466 = vst [vmem:[#allocation21_spill] sm:$0xff] %v3303_v41 }
 0x53a   :  { %v1185_v46 = vadd.f32 %v1184_v44, %v2834_v25  ;;  %v1187_v49 = vsub.f32 1.0, %v2280_v47  ;;  %v1191_v15 = vmul.f32 %v2280_v47, %v1189_v50 }
 0x53c   :  { %2281 = vtanh.f32 %v1185_v46 }
 0x549   :  { %v2282_v52 = vpop.eup %2281 }
 0x54a   :  { %v1188_v53 = vmul.f32 %v2282_v52, %v1187_v49 }
 0x54c   :  { %v3199_v61 = vadd.f32 %v1191_v15, %v1188_v53 }
 0x54e   :  { %1193 = vst [vmem:[#allocation10] sm:$0x10] %v3199_v61  ;;  %v1195_v62 = vrot.slane %v3199_v61, 4 }
 0x550   :  { %1262 = vmatmul.mubr.f32.vlgmr.msra.gmra.mxu0 %v1195_v62  ;;  %2152 = vmatmul.mubr.f32.vlgmr.msra.gmra.mxu1 %v1195_v62 }
 0x551   :  { %1376 = vmatpush1.msra.mxu0 %v3073_v18  ;;  %2155 = vmatpush3.msra.mxu1 %v3076_v12 }
 0x552   :  { %1377 = vmatprep.subr.mxu0 %v3079_v0  ;;  %2156 = vmatprep.subr.mxu1 %v3441_v8 }
 0x553   :  { %1378 = vmatpush1.msra.mxu0 %v3083_v22  ;;  %2157 = vmatpush3.msra.mxu1 %v3086_v14 }
 0x554   :  { %1379 = vmatprep.subr.mxu0 %v3089_v1  ;;  %2158 = vmatprep.subr.mxu1 %v3441_v8 }
 0x555   :  { %1380 = vmatpush1.msra.mxu0 %v3093_v2  ;;  %2159 = vmatpush3.msra.mxu1 %v3096_v6 }
 0x556   :  { %1381 = vmatprep.subr.mxu0 %v3099_v11  ;;  %2160 = vmatprep.subr.mxu1 %v3441_v8 }
 0x557   :  { %1382 = vmatpush1.msra.mxu0 %v3103_v16  ;;  %2161 = vmatpush3.msra.mxu1 %v3106_v13 }
 0x558   :  { %1383 = vmatprep.subr.mxu0 %v3109_v30  ;;  %2162 = vmatprep.subr.mxu1 %v3441_v8 }
 0x559   :  { %1384 = vmatpush1.msra.mxu0 %v3113_v31  ;;  %2163 = vmatpush3.msra.mxu1 %v3220_v9 }
 0x55a   :  { %1385 = vmatprep.subr.mxu0 %v3117_v32  ;;  %2164 = vmatprep.subr.mxu1 %v3441_v8 }
 0x55b   :  { %1386 = vmatpush1.msra.mxu0 %v3121_v33  ;;  %2165 = vmatpush3.msra.mxu1 %v3226_v4 }
 0x55c   :  { %1387 = vmatprep.subr.mxu0 %v3125_v34  ;;  %2166 = vmatprep.subr.mxu1 %v3441_v8 }
 0x55d   :  { %1388 = vmatpush1.msra.mxu0 %v3129_v35  ;;  %2167 = vmatpush3.msra.mxu1 %v3232_v21 }
 0x55e   :  { %1389 = vmatprep.subr.mxu0 %v3133_v42  ;;  %2168 = vmatprep.subr.mxu1 %v3441_v8 }
 0x55f   :  { %1390 = vmatpush1.msra.mxu0 %v3137_v36  ;;  %2169 = vmatpush3.msra.mxu1 %v3238_v10 }
 0x560   :  { %1391 = vmatprep.subr.mxu0 %v3141_v45  ;;  %2170 = vmatprep.subr.mxu1 %v3441_v8 }
 0x561   :  { %1392 = vmatpush1.msra.mxu0 %v3145_v37  ;;  %2171 = vmatpush3.msra.mxu1 %v3244_v55 }
 0x562   :  { %1393 = vmatprep.subr.mxu0 %v3149_v48  ;;  %2172 = vmatprep.subr.mxu1 %v3441_v8 }
 0x563   :  { %1394 = vmatpush1.msra.mxu0 %v3153_v38  ;;  %2173 = vmatpush3.msra.mxu1 %v3250_v56 }
 0x564   :  { %1395 = vmatprep.subr.mxu0 %v3157_v51  ;;  %2174 = vmatprep.subr.mxu1 %v3441_v8 }
 0x565   :  { %1396 = vmatpush1.msra.mxu0 %v3161_v39  ;;  %2175 = vmatpush3.msra.mxu1 %v3256_v57 }
 0x566   :  { %1397 = vmatprep.subr.mxu0 %v3165_v54  ;;  %2176 = vmatprep.subr.mxu1 %v3441_v8 }
 0x567   :  { %1398 = vmatpush1.msra.mxu0 %v3169_v40  ;;  %2177 = vmatpush3.msra.mxu1 %v3262_v58 }
 0x568   :  { %1399 = vmatprep.subr.mxu0 %v3265_v59  ;;  %2178 = vmatprep.subr.mxu1 %v3441_v8 }
 0x569   :  { %1400 = vmatpush1.msra.mxu0 %v3269_v60  ;;  %2179 = vmatpush3.msra.mxu1 %v3272_v63 }
 0x56a   :  { %1401 = vmatprep.subr.mxu0 %v3275_v3  ;;  %2180 = vmatprep.subr.mxu1 %v3441_v8 }
 0x56b   :  { %1402 = vmatpush1.msra.mxu0 %v3279_v5  ;;  %2181 = vmatpush3.msra.mxu1 %v3282_v20 }
 0x56c   :  { %1403 = vmatprep.subr.mxu0 %v3285_v23  ;;  %2182 = vmatprep.subr.mxu1 %v3441_v8 }
 0x56d   :  { %1404 = vmatpush1.msra.mxu0 %v3289_v24  ;;  %2183 = vmatpush3.msra.mxu1 %v3292_v26 }
 0x56e   :  { %1405 = vmatprep.subr.mxu0 %v3295_v27  ;;  %2184 = vmatprep.subr.mxu1 %v3441_v8 }
 0x56f   :  { %1406 = vmatpush1.msra.mxu0 %v3299_v28  ;;  %1439 = vmatprep.mubr.f32.mxu0 %v3441_v8 }
 0x570   :  { %2185 = vmatpush3.msra.mxu1 %v3303_v41  ;;  %2186 = vmatprep.mubr.msk.f32.mxu1 %vm2470_vm0, %v3441_v8 }
 0x571   :  { %1553 = vmatprep.subr.mxu0 %v3060_v29  ;;  %2189 = vmatprep.subr.mxu1 %v3441_v8 }
 0x610   :  { %v1263_v43 = vpop.f32.mrf.mxu0  ;;  %v1334_v44 = vpop.f32.mrf.mxu1 }
 0x611   :  { %v1340_v46 = vrot.slane %v1263_v43, 3  ;;  %v1358_v27 = vadd.f32 %v1334_v44, %v2831_v17 }
 0x612   :  { %v1265_v47 = vpop.f32.mrf.mxu0  ;;  %v2153_v49 = vpop.f32.mrf.mxu1 }
 0x613   :  { %v1344_v50 = vadd.f32 %v1340_v46, %v2822_v19  ;;  %v1341_v53 = vrot.slane %v1265_v47, 3  ;;  %v1360_v24 = vrot.slane %v1358_v27, 3 }
 0x615   :  { %v1786_v52 = vmul.f32 -1.442695, %v1344_v50  ;;  %v1345_v15 = vadd.f32 %v1341_v53, %v3447_v7  ;;  %v1367_v50 = vrot.slane %v3199_v61, 7 }
 0x617   :  { %2283 = vpow2.f32 %v1786_v52  ;;  %v1787_v62 = vmul.f32 -1.442695, %v1345_v15 }
 0x619   :  { %2285 = vpow2.f32 %v1787_v62 }
 0x624   :  { %v2284_v41 = vpop.eup %2283 }
 0x625   :  { %v1352_v28 = vadd.f32 1.0, %v2284_v41 }
 0x626   :  { %v2286_v29 = vpop.eup %2285 }
 0x627   :  { %2287 = vrcp.f32 %v1352_v28  ;;  %v1353_v26 = vadd.f32 1.0, %v2286_v29 }
 0x629   :  { %2289 = vrcp.f32 %v1353_v26 }
 0x634   :  { %v2288_v43 = vpop.eup %2287 }
 0x635   :  { %v1362_v23 = vmul.f32 %v2288_v43, %v1360_v24 }
 0x636   :  { %v2290_v47 = vpop.eup %2289 }
 0x637   :  { %v1363_v46 = vadd.f32 %v1362_v23, %v2834_v25  ;;  %v1365_v49 = vsub.f32 1.0, %v2290_v47  ;;  %v1369_v15 = vmul.f32 %v2290_v47, %v1367_v50 }
 0x639   :  { %2291 = vtanh.f32 %v1363_v46 }
 0x646   :  { %v2292_v52 = vpop.eup %2291 }
 0x647   :  { %v1366_v53 = vmul.f32 %v2292_v52, %v1365_v49 }
 0x649   :  { %v3315_v41 = vadd.f32 %v1369_v15, %v1366_v53 }
 0x64b   :  { %1371 = vst [vmem:[#allocation10] sm:$0x20] %v3315_v41  ;;  %v1373_v17 = vrot.slane %v3315_v41, 5  ;;  %v1545_v61 = vrot.slane %v3315_v41, 7 }
 0x64d   :  { %1440 = vmatmul.mubr.f32.vlgmr.msra.gmra.mxu0 %v1373_v17  ;;  %2187 = vmatmul.mubr.f32.vlgmr.msra.gmra.mxu1 %v1373_v17 }
 0x64e   :  { %1554 = vmatpush1.msra.mxu0 %v3073_v18  ;;  %2190 = vmatpush3.msra.mxu1 %v3076_v12  ;;  %v3467_v18 = vld [vmem:[#allocation25_spill] sm:$0xff]  ;;  %v3468_v12 = vld [vmem:[#allocation18_spill] sm:$0xff] }
 0x64f   :  { %1555 = vmatprep.subr.mxu0 %v3079_v0  ;;  %2191 = vmatprep.subr.mxu1 %v3441_v8  ;;  %v3469_v0 = vld [vmem:[#allocation19_spill] sm:$0xff] }
 0x650   :  { %1556 = vmatpush1.msra.mxu0 %v3083_v22  ;;  %2192 = vmatpush3.msra.mxu1 %v3086_v14  ;;  %v3470_v22 = vld [vmem:[#allocation20_spill] sm:$0xff]  ;;  %v3471_v14 = vld [vmem:[#allocation23_spill] sm:$0xff] }
 0x651   :  { %1557 = vmatprep.subr.mxu0 %v3089_v1  ;;  %2193 = vmatprep.subr.mxu1 %v3441_v8  ;;  %v3472_v1 = vld [vmem:[#allocation21_spill] sm:$0xff] }
 0x652   :  { %1558 = vmatpush1.msra.mxu0 %v3093_v2  ;;  %2194 = vmatpush3.msra.mxu1 %v3096_v6 }
 0x653   :  { %1559 = vmatprep.subr.mxu0 %v3099_v11  ;;  %2195 = vmatprep.subr.mxu1 %v3441_v8 }
 0x654   :  { %1560 = vmatpush1.msra.mxu0 %v3103_v16  ;;  %2196 = vmatpush3.msra.mxu1 %v3106_v13 }
 0x655   :  { %1561 = vmatprep.subr.mxu0 %v3109_v30  ;;  %2197 = vmatprep.subr.mxu1 %v3441_v8 }
 0x656   :  { %1562 = vmatpush1.msra.mxu0 %v3113_v31  ;;  %2198 = vmatpush3.msra.mxu1 %v3220_v9 }
 0x657   :  { %1563 = vmatprep.subr.mxu0 %v3117_v32  ;;  %2199 = vmatprep.subr.mxu1 %v3441_v8 }
 0x658   :  { %1564 = vmatpush1.msra.mxu0 %v3121_v33  ;;  %2200 = vmatpush3.msra.mxu1 %v3226_v4 }
 0x659   :  { %1565 = vmatprep.subr.mxu0 %v3125_v34  ;;  %2201 = vmatprep.subr.mxu1 %v3441_v8 }
 0x65a   :  { %1566 = vmatpush1.msra.mxu0 %v3129_v35  ;;  %2202 = vmatpush3.msra.mxu1 %v3232_v21 }
 0x65b   :  { %1567 = vmatprep.subr.mxu0 %v3133_v42  ;;  %2203 = vmatprep.subr.mxu1 %v3441_v8 }
 0x65c   :  { %1568 = vmatpush1.msra.mxu0 %v3137_v36  ;;  %2204 = vmatpush3.msra.mxu1 %v3238_v10 }
 0x65d   :  { %1569 = vmatprep.subr.mxu0 %v3141_v45  ;;  %2205 = vmatprep.subr.mxu1 %v3441_v8 }
 0x65e   :  { %1570 = vmatpush1.msra.mxu0 %v3145_v37  ;;  %2206 = vmatpush3.msra.mxu1 %v3244_v55 }
 0x65f   :  { %1571 = vmatprep.subr.mxu0 %v3149_v48  ;;  %2207 = vmatprep.subr.mxu1 %v3441_v8 }
 0x660   :  { %1572 = vmatpush1.msra.mxu0 %v3153_v38  ;;  %2208 = vmatpush3.msra.mxu1 %v3250_v56 }
 0x661   :  { %1573 = vmatprep.subr.mxu0 %v3157_v51  ;;  %2209 = vmatprep.subr.mxu1 %v3441_v8 }
 0x662   :  { %1574 = vmatpush1.msra.mxu0 %v3161_v39  ;;  %2210 = vmatpush3.msra.mxu1 %v3256_v57 }
 0x663   :  { %1575 = vmatprep.subr.mxu0 %v3165_v54  ;;  %2211 = vmatprep.subr.mxu1 %v3441_v8 }
 0x664   :  { %1576 = vmatpush1.msra.mxu0 %v3169_v40  ;;  %2212 = vmatpush3.msra.mxu1 %v3262_v58 }
 0x665   :  { %1577 = vmatprep.subr.mxu0 %v3265_v59  ;;  %2213 = vmatprep.subr.mxu1 %v3441_v8 }
 0x666   :  { %1578 = vmatpush1.msra.mxu0 %v3269_v60  ;;  %2214 = vmatpush3.msra.mxu1 %v3272_v63 }
 0x667   :  { %1579 = vmatprep.subr.mxu0 %v3275_v3  ;;  %2215 = vmatprep.subr.mxu1 %v3441_v8 }
 0x668   :  { %1580 = vmatpush1.msra.mxu0 %v3279_v5  ;;  %2216 = vmatpush3.msra.mxu1 %v3282_v20 }
 0x669   :  { %1581 = vmatprep.subr.mxu0 %v3467_v18  ;;  %2217 = vmatprep.subr.mxu1 %v3441_v8 }
 0x66a   :  { %1582 = vmatpush1.msra.mxu0 %v3468_v12  ;;  %2218 = vmatpush3.msra.mxu1 %v3469_v0 }
 0x66b   :  { %1583 = vmatprep.subr.mxu0 %v3470_v22  ;;  %2219 = vmatprep.subr.mxu1 %v3441_v8 }
 0x66c   :  { %1584 = vmatpush1.msra.mxu0 %v3471_v14  ;;  %1617 = vmatprep.mubr.f32.mxu0 %v3441_v8 }
 0x66d   :  { %2220 = vmatpush3.msra.mxu1 %v3472_v1  ;;  %2221 = vmatprep.mubr.msk.f32.mxu1 %vm2470_vm0, %v3441_v8  ;;  %v2361_v8 = vld [vmem:[%s3405_s5] sm:$0x1]  ;;  %s2471_s5 = smov [#allocation10]  }
 0x66e   :  { %s1735_s9 = sshll.u32 %s2471_s5, 4  ;;  %s1736_s9 = int_to_ptr.vmem [resolvable:$true] %s1735_s9 }
 0x66f   :  { %s2414_s0 = scalar_lea.vmem %s1736_s9, 128  ;;  %p2419_p2 = scmp.lt.s32.totalorder %s1736_s9, %s1736_s9 }
 0x670   :  { %p2415_p1 = scmp.ne.s32.totalorder %s1736_s9, %s2414_s0  ;;  %p2420_p3 = scmp.lt.s32.totalorder %s2414_s0, %s2414_s0 }
 0x672   :  { %p2421_p4 = por %p2420_p3, %p2419_p2 }
 0x674   :  { %p2422_p5 = pnand %p2421_p4, %p2415_p1 }
 0x70d   :  { %v1441_v2 = vpop.f32.mrf.mxu0  ;;  %v1512_v6 = vpop.f32.mrf.mxu1 }
 0x70e   :  { %v1518_v11 = vrot.slane %v1441_v2, 2  ;;  %v1536_v45 = vadd.f32 %v2361_v8, %v1512_v6 }
 0x70f   :  { %v1443_v16 = vpop.f32.mrf.mxu0  ;;  %v2188_v13 = vpop.f32.mrf.mxu1 }
 0x710   :  { %v1522_v30 = vadd.f32 %v1518_v11, %v2822_v19  ;;  %v1519_v32 = vrot.slane %v1443_v16, 2  ;;  %v1538_v48 = vrot.slane %v1536_v45, 2 }
 0x712   :  { %v1788_v31 = vmul.f32 -1.442695, %v1522_v30  ;;  %v1523_v33 = vadd.f32 %v1519_v32, %v3447_v7 }
 0x714   :  { %2293 = vpow2.f32 %v1788_v31  ;;  %v1789_v34 = vmul.f32 -1.442695, %v1523_v33 }
 0x716   :  { %2295 = vpow2.f32 %v1789_v34 }
 0x721   :  { %v2294_v35 = vpop.eup %2293 }
 0x722   :  { %v1530_v42 = vadd.f32 1.0, %v2294_v35 }
 0x723   :  { %v2296_v36 = vpop.eup %2295 }
 0x724   :  { %2297 = vrcp.f32 %v1530_v42  ;;  %v1531_v37 = vadd.f32 1.0, %v2296_v36 }
 0x726   :  { %2299 = vrcp.f32 %v1531_v37 }
 0x731   :  { %v2298_v38 = vpop.eup %2297 }
 0x732   :  { %v1540_v51 = vmul.f32 %v2298_v38, %v1538_v48 }
 0x733   :  { %v2300_v54 = vpop.eup %2299 }
 0x734   :  { %v1541_v39 = vadd.f32 %v1540_v51, %v2834_v25  ;;  %v1543_v40 = vsub.f32 1.0, %v2300_v54  ;;  %v1547_v21 = vmul.f32 %v2300_v54, %v1545_v61 }
 0x736   :  { %2301 = vtanh.f32 %v1541_v39 }
 0x743   :  { %v2302_v9 = vpop.eup %2301 }
 0x744   :  { %v1544_v4 = vmul.f32 %v2302_v9, %v1543_v40 }
 0x746   :  { %v1548_v10 = vadd.f32 %v1547_v21, %v1544_v4 }
 0x748   :  { %1549 = vst [vmem:[#allocation10] sm:$0x40] %v1548_v10  ;;  %v1551_v55 = vrot.slane %v1548_v10, 6  ;;  %v1723_v47 = vrot.slane %v1548_v10, 7 }
 0x74a   :  { %1618 = vmatmul.mubr.f32.vlgmr.msra.gmra.mxu0 %v1551_v55  ;;  %2222 = vmatmul.mubr.f32.vlgmr.msra.gmra.mxu1 %v1551_v55 }
 0x80a   :  { %v1619_v56 = vpop.f32.mrf.mxu0  ;;  %v1690_v57 = vpop.f32.mrf.mxu1 }
 0x80b   :  { %v1696_v58 = vrot.slane %v1619_v56, 1  ;;  %v1714_v28 = vadd.f32 %v2361_v8, %v1690_v57 }
 0x80c   :  { %v1621_v59 = vpop.f32.mrf.mxu0  ;;  %v2223_v60 = vpop.f32.mrf.mxu1 }
 0x80d   :  { %v1700_v63 = vadd.f32 %v1696_v58, %v2822_v19  ;;  %v1697_v5 = vrot.slane %v1621_v59, 1  ;;  %v1716_v62 = vrot.slane %v1714_v28, 1 }
 0x80f   :  { %v1790_v3 = vmul.f32 -1.442695, %v1700_v63  ;;  %v1701_v20 = vadd.f32 %v1697_v5, %v3447_v7 }
 0x811   :  { %2303 = vpow2.f32 %v1790_v3  ;;  %v1791_v23 = vmul.f32 -1.442695, %v1701_v20 }
 0x813   :  { %2305 = vpow2.f32 %v1791_v23 }
 0x81e   :  { %v2304_v24 = vpop.eup %2303 }
 0x81f   :  { %v1708_v26 = vadd.f32 1.0, %v2304_v24 }
 0x820   :  { %v2306_v27 = vpop.eup %2305 }
 0x821   :  { %2307 = vrcp.f32 %v1708_v26  ;;  %v1709_v44 = vadd.f32 1.0, %v2306_v27 }
 0x823   :  { %2309 = vrcp.f32 %v1709_v44 }
 0x82e   :  { %v2308_v29 = vpop.eup %2307 }
 0x82f   :  { %v1718_v43 = vmul.f32 %v2308_v29, %v1716_v62 }
 0x830   :  { %v2310_v19 = vpop.eup %2309 }
 0x831   :  { %v1719_v46 = vadd.f32 %v1718_v43, %v2834_v25  ;;  %v1721_v49 = vsub.f32 1.0, %v2310_v19  ;;  %v1725_v52 = vmul.f32 %v2310_v19, %v1723_v47 }
 0x833   :  { %2311 = vtanh.f32 %v1719_v46 }
 0x840   :  { %v2312_v50 = vpop.eup %2311 }
 0x841   :  { %v1722_v7 = vmul.f32 %v2312_v50, %v1721_v49 }
 0x843   :  { %v1726_v53 = vadd.f32 %v1725_v52, %v1722_v7 }
 0x845   :  { %1727 = vst [vmem:[#allocation10] sm:$0x80] %v1726_v53  ;;  %1728 = vst [vmem:[#allocation11 - $0x7] sm:$0x80] %v1726_v53 }
 0x846   :  { %2425 = shalt.err (!%p2422_p5)
}
 0x847   :  { %1738 = dma.vmem_to_hbm [thread:$0]  %s1736_s9, 128, %s3407_s7, [#allocation7]  }
 0x848   :  { %s2434_s14 = scalar_lea.vmem %s1746_s11, 16  ;;  %s2438_s15 = scalar_lea.vmem %s1746_s11, 32 }
 0x849   :  { %p2435_p6 = scmp.ne.s32.totalorder %s1746_s11, %s2434_s14  ;;  %p2439_p7 = scmp.lt.s32.totalorder %s1746_s11, %s1746_s11 }
 0x84a   :  { %p2440_p8 = scmp.lt.s32.totalorder %s2438_s15, %s2434_s14 }
 0x84c   :  { %p2441_p9 = por %p2440_p8, %p2439_p7 }
 0x84e   :  { %p2442_p10 = pnand %p2441_p9, %p2435_p6 }
 0x850   :  { %2445 = shalt.err (!%p2442_p10)
}
 0x851   :  { %1748 = dma.vmem_to_hbm [thread:$0]  %s1746_s11, 16, %s3408_s8, [#allocation12]  }
 0x852   :  { %2460 = dma.done.wait [#allocation7], 128  }
 0x853   :  { %2461 = vsyncadd [#allocation7], 4294967168 }
 0x854   :  { %2462 = dma.done.wait [#allocation12], 16  }
 0x855   :  { %2463 = vsyncadd [#allocation12], 4294967280 }
 0x856   :  { %1755 = vsyncpa [#allocation6], 1 }
 0x857   :  { %1756 = vsyncpa [#allocation9], 1 }
 0x858   :  { %1757 = vsyncpa [#allocation7], 1 }
 0x859   :  { %1758 = vsyncpa [#allocation12], 1 }

</bundles_post_ra>
